<compile_context>
chip_gen: v7x
topology: tpu7x:2x2x1
jax: 0.10.0
libtpu: 0.0.40
codegen_flags: <defaults>
</compile_context>

<pallas_src>
from functools import partial

import jax
import jax.numpy as jnp
from jax.experimental import pallas as pl
from jax.experimental.pallas import tpu as pltpu


def _round_up(x, m):
    return (x + m - 1) // m * m


def _vmem_capacity_bytes():
    try:
        return int(pltpu.get_tpu_info().vmem_capacity_bytes)
    except Exception:
        return 64 * 1024 * 1024  # conservative (v7x-sized) fallback


# ----------------------------------------------------------------------------
# Kernel 1: per-edge messages ("mail").  Grid: edge tiles, "parallel".
# ----------------------------------------------------------------------------
def mail_kernel(srcf_ref, edge_ref, w1_ref, b1_ref, w2_ref, b2_ref,
                rmat_ref, smat_ref, mail_ref):
    f32, bf16 = jnp.float32, jnp.bfloat16

    # Edge network: Linear(H->2H) + ReLU + Linear(2H->H*H); bf16 MXU, f32 acc.
    edge = edge_ref[...]                                                     # (Et, H) bf16
    h1 = jnp.maximum(
        jnp.dot(edge, w1_ref[...], preferred_element_type=f32) + b1_ref[...], 0.0)
    wflat = (jnp.dot(h1.astype(bf16), w2_ref[...], preferred_element_type=f32)
             + b2_ref[...])                                                  # (Et, H*H) f32

    # Per-edge bilinear message, lane-dense:
    #   src_rep[e, i*H+k] = src_feats[e, i];  mail = ((sf @ R) * wflat) @ S
    # TODO(synk): the R expansion is pure data replication (2*H^3 MXU flops per
    #   edge); replace with a VPU tile/broadcast once a relayout-free form exists.
    src_rep = jnp.dot(srcf_ref[...], rmat_ref[...], preferred_element_type=f32)
    prod = src_rep * wflat                                                   # VPU, lane-dense
    mail_ref[...] = jnp.dot(prod.astype(bf16), smat_ref[...],
                            preferred_element_type=f32)                      # (Et, H) f32


# ----------------------------------------------------------------------------
# Kernel 2: scatter-sum + ReLU + GRUCell + LayerNorm.
# Grid: (node tiles "parallel", edge tiles "arbitrary") with VMEM accumulator.
# ----------------------------------------------------------------------------
def scatter_gru_kernel(dst_ref, mail_ref, hidden_ref, w_ih_ref, w_hh_ref,
                       bi_ref, bh_ref, gamma_ref, beta_ref, out_ref, acc_ref,
                       *, hidden_dim, use_layer_norm):
    f32, bf16 = jnp.float32, jnp.bfloat16
    H = hidden_dim
    n_pid = pl.program_id(0)
    e_pid = pl.program_id(1)
    n_tile = acc_ref.shape[0]
    e_tile = mail_ref.shape[0]

    @pl.when(e_pid == 0)
    def _():
        acc_ref[...] = jnp.zeros_like(acc_ref)

    # Scatter-sum into this node tile via one-hot^T matmul (exact 0/1 mask).
    dst_ids = dst_ref[...]                                                   # (1, Et) int32
    row = jax.lax.broadcasted_iota(jnp.int32, (n_tile, e_tile), 0) + n_pid * n_tile
    dst_oh = (row == dst_ids).astype(bf16)                                   # (Nt, Et)
    # NOTE: mail is rounded to bf16 before accumulation (mirrored by the bf16
    # reference); switch to an f32 matmul here if tighter f32 parity is needed.
    acc_ref[...] += jnp.dot(dst_oh, mail_ref[...].astype(bf16),
                            preferred_element_type=f32)

    # Finalize on the last edge tile: ReLU + GRUCell + LayerNorm (f32 state).
    @pl.when(e_pid == pl.num_programs(1) - 1)
    def _():
        x = jnp.maximum(acc_ref[...], 0.0)                                   # (Nt, H) f32
        h = hidden_ref[...]                                                  # (Nt, H) f32
        gi = (jnp.dot(x.astype(bf16), w_ih_ref[...], preferred_element_type=f32)
              + bi_ref[...])                                                 # (Nt, 3H)
        gh = (jnp.dot(h.astype(bf16), w_hh_ref[...], preferred_element_type=f32)
              + bh_ref[...])                                                 # (Nt, 3H)
        r = jax.nn.sigmoid(gi[:, 0:H] + gh[:, 0:H])
        z = jax.nn.sigmoid(gi[:, H:2 * H] + gh[:, H:2 * H])
        n = jnp.tanh(gi[:, 2 * H:3 * H] + r * gh[:, 2 * H:3 * H])
        h_new = (1.0 - z) * n + z * h
        if use_layer_norm:
            mean = jnp.mean(h_new, axis=-1, keepdims=True)
            var = jnp.mean((h_new - mean) ** 2, axis=-1, keepdims=True)
            h_new = (h_new - mean) * jax.lax.rsqrt(var + 1e-5)
            h_new = h_new * gamma_ref[...] + beta_ref[...]
        out_ref[...] = h_new.astype(out_ref.dtype)


# ----------------------------------------------------------------------------
# Parameter prep (one-time: transposes, bf16 casts, constant R/S matrices)
# ----------------------------------------------------------------------------
def prepare_params(params, H):
    bf16, f32 = jnp.bfloat16, jnp.float32
    c = jnp.arange(H * H)
    R = (c[None, :] // H == jnp.arange(H)[:, None]).astype(bf16)             # (H, H*H)
    S = (c[:, None] % H == jnp.arange(H)[None, :]).astype(bf16)              # (H*H, H)
    return {
        'w1': params['w1'].T.astype(bf16),              # (H, 2H)
        'b1': params['b1'][None, :].astype(f32),        # (1, 2H)
        'w2': params['w2'].T.astype(bf16),              # (2H, H*H)
        'b2': params['b2'][None, :].astype(f32),        # (1, H*H)
        'R': R, 'S': S,
        'w_ih': params['w_ih'].T.astype(bf16),          # (H, 3H)
        'w_hh': params['w_hh'].T.astype(bf16),          # (H, 3H)
        'b_ih': params['b_ih'][None, :].astype(f32),    # (1, 3H)
        'b_hh': params['b_hh'][None, :].astype(f32),    # (1, 3H)
        'gamma': params['gamma'][None, :].astype(f32),  # (1, H)
        'beta': params['beta'][None, :].astype(f32),    # (1, H)
    }


# ----------------------------------------------------------------------------
# Wrapper
# ----------------------------------------------------------------------------
def mpnn_layer(node, edge, hidden, src, dst, prep, *, use_layer_norm=True,
               e_tile_max=512, n_tile_max=512):
    """Pallas implementation of MPNNLayer.forward (batch_norm=False path)."""
    N, H = node.shape
    E = edge.shape[0]
    f32, bf16 = jnp.float32, jnp.bfloat16

    vmem_cap = _vmem_capacity_bytes()
    vmem_limit = 38 * 2 ** 20 if vmem_cap <= 64 * 2 ** 20 else 96 * 2 ** 20

    # ---- tiling ---------------------------------------------------------------
    # Edge tile for the scatter kernel: multiple of 128 so the (1, E_TILE) dst
    # index block is lane-legal; one shared edge padding for both kernels.
    E_TILE2 = min(512, _round_up(max(E, 1), 128))
    E_pad = _round_up(max(E, 1), E_TILE2)

    # Edge tile for the mail kernel: largest divisor of E_TILE2 (multiple of 16
    # for bf16 sublane packing) whose (Et, H*H) intermediates fit the VMEM budget.
    resident = 8 * H ** 3 + 4 * H * H                    # w2 + R + S (bf16) + b2 (f32)
    inter_budget = max(2 * 2 ** 20, vmem_cap // 3 - resident)
    per_edge_bytes = 14 * H * H + 16 * H                 # wflat/src_rep/prod (+ bf16 copies)
    E_TILE1 = 16
    for c in range(16, E_TILE2 + 1, 16):
        if E_TILE2 % c == 0 and c <= e_tile_max and c * per_edge_bytes <= inter_budget:
            E_TILE1 = c

    N_TILE = min(n_tile_max, _round_up(N, 8))
    N_pad = _round_up(N, N_TILE)

    # ---- wrapper-side gather & padding ------------------------------------------
    # node[src] is a plain row gather (O(E*H)); replaces the O(E*N*H) in-kernel
    # one-hot gather.  Padded edges carry src_feats = 0 and dst = -1 (no match).
    # TODO(synk): hoist padding/gather prep out of the per-layer call when the
    #   same graph is reused across T message-passing steps.
    src_feats = jnp.take(node.astype(bf16), src.astype(jnp.int32), axis=0)
    pe, pn = E_pad - E, N_pad - N
    srcf_p = jnp.pad(src_feats, ((0, pe), (0, 0)))
    edge_p = jnp.pad(edge.astype(bf16), ((0, pe), (0, 0)))
    dst_p = jnp.pad(dst.astype(jnp.int32)[None, :], ((0, 0), (0, pe)),
                    constant_values=-1)
    hidden_p = jnp.pad(hidden.astype(f32), ((0, pn), (0, 0)))

    # ---- kernel 1: per-edge mail -------------------------------------------------
    in1 = (srcf_p, edge_p, prep['w1'], prep['b1'], prep['w2'], prep['b2'],
           prep['R'], prep['S'])
    flops1 = int(E_pad) * (4 * H * H + 8 * H ** 3)
    bytes1 = sum(int(a.size) * a.dtype.itemsize for a in in1) + E_pad * H * 4
    # TODO(synk): mark the constant-index-map weight blocks single-buffered
    #   (pipeline_mode=pl.Buffered(1)) to reclaim VMEM headroom on v7x.
    mail = pl.pallas_call(
        mail_kernel,
        out_shape=jax.ShapeDtypeStruct((E_pad, H), f32),
        grid_spec=pltpu.PrefetchScalarGridSpec(
            num_scalar_prefetch=0,
            grid=(E_pad // E_TILE1,),
            in_specs=[
                pl.BlockSpec((E_TILE1, H), lambda e: (e, 0)),
                pl.BlockSpec((E_TILE1, H), lambda e: (e, 0)),
                pl.BlockSpec(prep['w1'].shape, lambda e: (0, 0)),
                pl.BlockSpec(prep['b1'].shape, lambda e: (0, 0)),
                pl.BlockSpec(prep['w2'].shape, lambda e: (0, 0)),
                pl.BlockSpec(prep['b2'].shape, lambda e: (0, 0)),
                pl.BlockSpec(prep['R'].shape, lambda e: (0, 0)),
                pl.BlockSpec(prep['S'].shape, lambda e: (0, 0)),
            ],
            out_specs=pl.BlockSpec((E_TILE1, H), lambda e: (e, 0)),
        ),
        compiler_params=pltpu.CompilerParams(
            dimension_semantics=("parallel",),           # both TCs on v7x take edge tiles
            vmem_limit_bytes=vmem_limit),
        cost_estimate=pl.CostEstimate(flops=flops1, transcendentals=0,
                                      bytes_accessed=int(bytes1)),
    )(*in1)

    # ---- kernel 2: scatter-sum + GRU + LayerNorm ----------------------------------
    in2 = (dst_p, mail, hidden_p, prep['w_ih'], prep['w_hh'],
           prep['b_ih'], prep['b_hh'], prep['gamma'], prep['beta'])
    flops2 = int(2 * N_pad * E_pad * H + 12 * N_pad * H * H)
    bytes2 = sum(int(a.size) * a.dtype.itemsize for a in in2) + N_pad * H * 4
    out = pl.pallas_call(
        partial(scatter_gru_kernel, hidden_dim=H, use_layer_norm=use_layer_norm),
        out_shape=jax.ShapeDtypeStruct((N_pad, H), f32),
        grid_spec=pltpu.PrefetchScalarGridSpec(
            num_scalar_prefetch=0,
            grid=(N_pad // N_TILE, E_pad // E_TILE2),
            in_specs=[
                pl.BlockSpec((1, E_TILE2), lambda nb, eb: (0, eb)),
                pl.BlockSpec((E_TILE2, H), lambda nb, eb: (eb, 0)),
                pl.BlockSpec((N_TILE, H), lambda nb, eb: (nb, 0)),
                pl.BlockSpec(prep['w_ih'].shape, lambda nb, eb: (0, 0)),
                pl.BlockSpec(prep['w_hh'].shape, lambda nb, eb: (0, 0)),
                pl.BlockSpec(prep['b_ih'].shape, lambda nb, eb: (0, 0)),
                pl.BlockSpec(prep['b_hh'].shape, lambda nb, eb: (0, 0)),
                pl.BlockSpec(prep['gamma'].shape, lambda nb, eb: (0, 0)),
                pl.BlockSpec(prep['beta'].shape, lambda nb, eb: (0, 0)),
            ],
            out_specs=pl.BlockSpec((N_TILE, H), lambda nb, eb: (nb, 0)),
            scratch_shapes=[pltpu.VMEM((N_TILE, H), f32)],
        ),
        compiler_params=pltpu.CompilerParams(
            dimension_semantics=("parallel", "arbitrary"),
            vmem_limit_bytes=vmem_limit),
        cost_estimate=pl.CostEstimate(flops=flops2,
                                      transcendentals=int(3 * N_pad * H),
                                      bytes_accessed=int(bytes2)),
    )(*in2)
    return out[:N]


# ----------------------------------------------------------------------------
# References
# ----------------------------------------------------------------------------
def mpnn_ref_f32(node, edge, hidden, src, dst, params, use_layer_norm=True):
    """Pure-f32 JAX reference matching the PyTorch semantics."""
    H = node.shape[1]
    h1 = jax.nn.relu(edge @ params['w1'].T + params['b1'])
    wflat = h1 @ params['w2'].T + params['b2']
    W = wflat.reshape(-1, H, H)
    mail = jnp.einsum('eh,ehk->ek', node[src], W)
    new_feats = jnp.zeros_like(node).at[dst].add(mail)
    x = jax.nn.relu(new_feats)
    gi = x @ params['w_ih'].T + params['b_ih']
    gh = hidden @ params['w_hh'].T + params['b_hh']
    r = jax.nn.sigmoid(gi[:, :H] + gh[:, :H])
    z = jax.nn.sigmoid(gi[:, H:2 * H] + gh[:, H:2 * H])
    n = jnp.tanh(gi[:, 2 * H:] + r * gh[:, 2 * H:])
    h_new = (1 - z) * n + z * hidden
    if use_layer_norm:
        mean = h_new.mean(-1, keepdims=True)
        var = ((h_new - mean) ** 2).mean(-1, keepdims=True)
        h_new = (h_new - mean) * jax.lax.rsqrt(var + 1e-5) * params['gamma'] + params['beta']
    return h_new


def mpnn_ref_bf16(node, edge, hidden, src, dst, params, use_layer_norm=True):
    """Reference mirroring the kernels' bf16-operand / f32-accumulate matmuls."""
    H = node.shape[1]
    f32, bf16 = jnp.float32, jnp.bfloat16
    mm = lambda a, b: jnp.dot(a.astype(bf16), b.astype(bf16), preferred_element_type=f32)
    rb = lambda a: a.astype(bf16).astype(f32)

    h1 = jax.nn.relu(mm(edge, params['w1'].T) + params['b1'])
    wflat = mm(h1, params['w2'].T) + params['b2']
    src_feats = rb(node)[src]                               # bf16 gather, as in wrapper
    prod = src_feats[:, :, None] * wflat.reshape(-1, H, H)
    mail = jnp.sum(rb(prod), axis=1)                        # bf16(prod) @ S, f32 acc
    new_feats = jnp.zeros_like(node).at[dst].add(rb(mail))  # bf16(mail) scatter, f32 acc
    x = jax.nn.relu(new_feats)
    gi = mm(x, params['w_ih'].T) + params['b_ih']
    gh = mm(hidden, params['w_hh'].T) + params['b_hh']
    r = jax.nn.sigmoid(gi[:, :H] + gh[:, :H])
    z = jax.nn.sigmoid(gi[:, H:2 * H] + gh[:, H:2 * H])
    n = jnp.tanh(gi[:, 2 * H:] + r * gh[:, 2 * H:])
    h_new = (1 - z) * n + z * hidden
    if use_layer_norm:
        mean = h_new.mean(-1, keepdims=True)
        var = ((h_new - mean) ** 2).mean(-1, keepdims=True)
        h_new = (h_new - mean) * jax.lax.rsqrt(var + 1e-5) * params['gamma'] + params['beta']
    return h_new


def init_params(key, H):
    """Deterministic init following the PyTorch module's parameter shapes."""
    ks = jax.random.split(key, 8)

    def unif(k, shape, fan_in):
        bound = 1.0 / jnp.sqrt(fan_in)
        return jax.random.uniform(k, shape, jnp.float32, -bound, bound)

    return {
        'w1': unif(ks[0], (2 * H, H), H),
        'b1': unif(ks[1], (2 * H,), H),
        'w2': unif(ks[2], (H * H, 2 * H), 2 * H),
        'b2': unif(ks[3], (H * H,), 2 * H),
        'w_ih': unif(ks[4], (3 * H, H), H),
        'b_ih': unif(ks[5], (3 * H,), H),
        'w_hh': unif(ks[6], (3 * H, H), H),
        'b_hh': unif(ks[7], (3 * H,), H),
        'gamma': jnp.ones((H,), jnp.float32),
        'beta': jnp.zeros((H,), jnp.float32),
    }


if __name__ == "__main__":
    N, E, H = 8, 16, 32  # nodes, edges, hidden_dim

    key = jax.random.PRNGKey(0)
    k_node, k_edge, k_hid, k_src, k_dst, k_par = jax.random.split(key, 6)

    node = jax.random.normal(k_node, (N, H), jnp.float32)
    edge = jax.random.normal(k_edge, (E, H), jnp.float32)
    hidden_feats = jax.random.normal(k_hid, (N, H), jnp.float32)
    src = jax.random.randint(k_src, (E,), 0, N)
    dst = jax.random.randint(k_dst, (E,), 0, N)
    params = init_params(k_par, H)
    prep = prepare_params(params, H)

    out = mpnn_layer(node, edge, hidden_feats, src, dst, prep, use_layer_norm=True)
    out = jax.block_until_ready(out)
    assert out.shape == (N, H)

    ref_b = mpnn_ref_bf16(node, edge, hidden_feats, src, dst, params)
    err_b = float(jnp.max(jnp.abs(out - ref_b)))
    assert jnp.allclose(out, ref_b, rtol=5e-3, atol=5e-3), \
        f"max abs err vs bf16-mirrored ref: {err_b}"

    ref_f = mpnn_ref_f32(node, edge, hidden_feats, src, dst, params)
    err_f = float(jnp.max(jnp.abs(out - ref_f)))
    assert jnp.allclose(out, ref_f, rtol=2e-1, atol=2e-1), \
        f"max abs err vs f32 ref (sanity): {err_f}"

    print("KERNEL_OK")
</pallas_src>

<mosaic_0001>
module attributes {stable_mosaic.version = 11 : i64} {
  func.func @mail_kernel(%arg0: i32, %arg1: memref<128x32xbf16, #tpu.memory_space<vmem>>, %arg2: memref<128x32xbf16, #tpu.memory_space<vmem>>, %arg3: memref<32x64xbf16, #tpu.memory_space<vmem>>, %arg4: memref<1x64xf32, #tpu.memory_space<vmem>>, %arg5: memref<64x1024xbf16, #tpu.memory_space<vmem>>, %arg6: memref<1x1024xf32, #tpu.memory_space<vmem>>, %arg7: memref<32x1024xbf16, #tpu.memory_space<vmem>>, %arg8: memref<1024x32xbf16, #tpu.memory_space<vmem>>, %arg9: memref<128x32xf32, #tpu.memory_space<vmem>>) attributes {dimension_semantics = [#tpu.dimension_semantics<parallel>], iteration_bounds = array<i64: 1>, scalar_prefetch = 0 : i64, scratch_operands = 0 : i64, tpu.core_type = #tpu.core_type<tc>, window_params = [{transform_indices = @transform_0, window_bounds = array<i64: 128, 32>}, {transform_indices = @transform_1, window_bounds = array<i64: 128, 32>}, {pipeline_mode = #tpu.pipeline_mode<synchronous>, transform_indices = @transform_2, window_bounds = array<i64: 32, 64>}, {pipeline_mode = #tpu.pipeline_mode<synchronous>, transform_indices = @transform_3, window_bounds = array<i64: 1, 64>}, {pipeline_mode = #tpu.pipeline_mode<synchronous>, transform_indices = @transform_4, window_bounds = array<i64: 64, 1024>}, {pipeline_mode = #tpu.pipeline_mode<synchronous>, transform_indices = @transform_5, window_bounds = array<i64: 1, 1024>}, {pipeline_mode = #tpu.pipeline_mode<synchronous>, transform_indices = @transform_6, window_bounds = array<i64: 32, 1024>}, {pipeline_mode = #tpu.pipeline_mode<synchronous>, transform_indices = @transform_7, window_bounds = array<i64: 1024, 32>}, {transform_indices = @transform_8, window_bounds = array<i64: 128, 32>}]} {
    %c0 = arith.constant 0 : index
    %c0_0 = arith.constant 0 : index
    %0 = vector.load %arg2[%c0, %c0_0] : memref<128x32xbf16, #tpu.memory_space<vmem>>, vector<128x32xbf16>
    %c0_1 = arith.constant 0 : index
    %c0_2 = arith.constant 0 : index
    %1 = vector.load %arg3[%c0_1, %c0_2] : memref<32x64xbf16, #tpu.memory_space<vmem>>, vector<32x64xbf16>
    %cst = arith.constant dense<0.000000e+00> : vector<128x64xf32>
    %2 = tpu.matmul %0, %1, %cst {dimension_numbers = #tpu.dot_dimension_numbers<[1], [0], [0], [1], [0, 0, 1, 1], [], []>} : vector<128x32xbf16>, vector<32x64xbf16>, vector<128x64xf32> -> vector<128x64xf32>
    %c0_3 = arith.constant 0 : index
    %c0_4 = arith.constant 0 : index
    %3 = vector.load %arg4[%c0_3, %c0_4] : memref<1x64xf32, #tpu.memory_space<vmem>>, vector<1x64xf32>
    %4 = vector.broadcast %3 : vector<1x64xf32> to vector<128x64xf32>
    %5 = arith.addf %2, %4 : vector<128x64xf32>
    %cst_5 = arith.constant 0.000000e+00 : f32
    %6 = vector.broadcast %cst_5 : f32 to vector<128x64xf32>
    %7 = arith.maximumf %5, %6 : vector<128x64xf32>
    %8 = arith.truncf %7 : vector<128x64xf32> to vector<128x64xbf16>
    %c0_6 = arith.constant 0 : index
    %c0_7 = arith.constant 0 : index
    %9 = vector.load %arg5[%c0_6, %c0_7] : memref<64x1024xbf16, #tpu.memory_space<vmem>>, vector<64x1024xbf16>
    %cst_8 = arith.constant dense<0.000000e+00> : vector<128x1024xf32>
    %10 = tpu.matmul %8, %9, %cst_8 {dimension_numbers = #tpu.dot_dimension_numbers<[1], [0], [0], [1], [0, 0, 1, 1], [], []>} : vector<128x64xbf16>, vector<64x1024xbf16>, vector<128x1024xf32> -> vector<128x1024xf32>
    %c0_9 = arith.constant 0 : index
    %c0_10 = arith.constant 0 : index
    %11 = vector.load %arg6[%c0_9, %c0_10] : memref<1x1024xf32, #tpu.memory_space<vmem>>, vector<1x1024xf32>
    %12 = vector.broadcast %11 : vector<1x1024xf32> to vector<128x1024xf32>
    %13 = arith.addf %10, %12 : vector<128x1024xf32>
    %c0_11 = arith.constant 0 : index
    %c0_12 = arith.constant 0 : index
    %14 = vector.load %arg1[%c0_11, %c0_12] : memref<128x32xbf16, #tpu.memory_space<vmem>>, vector<128x32xbf16>
    %c0_13 = arith.constant 0 : index
    %c0_14 = arith.constant 0 : index
    %15 = vector.load %arg7[%c0_13, %c0_14] : memref<32x1024xbf16, #tpu.memory_space<vmem>>, vector<32x1024xbf16>
    %cst_15 = arith.constant dense<0.000000e+00> : vector<128x1024xf32>
    %16 = tpu.matmul %14, %15, %cst_15 {dimension_numbers = #tpu.dot_dimension_numbers<[1], [0], [0], [1], [0, 0, 1, 1], [], []>} : vector<128x32xbf16>, vector<32x1024xbf16>, vector<128x1024xf32> -> vector<128x1024xf32>
    %17 = arith.mulf %16, %13 : vector<128x1024xf32>
    %18 = arith.truncf %17 : vector<128x1024xf32> to vector<128x1024xbf16>
    %c0_16 = arith.constant 0 : index
    %c0_17 = arith.constant 0 : index
    %19 = vector.load %arg8[%c0_16, %c0_17] : memref<1024x32xbf16, #tpu.memory_space<vmem>>, vector<1024x32xbf16>
    %cst_18 = arith.constant dense<0.000000e+00> : vector<128x32xf32>
    %20 = tpu.matmul %18, %19, %cst_18 {dimension_numbers = #tpu.dot_dimension_numbers<[1], [0], [0], [1], [0, 0, 1, 1], [], []>} : vector<128x1024xbf16>, vector<1024x32xbf16>, vector<128x32xf32> -> vector<128x32xf32>
    %c0_19 = arith.constant 0 : index
    %c0_20 = arith.constant 0 : index
    %21 = vector.load %arg9[%c0_19, %c0_20] : memref<128x32xf32, #tpu.memory_space<vmem>>, vector<128x32xf32>
    tpu.vector_store %arg9[%c0_19, %c0_20], %20 {strides = array<i32>} : memref<128x32xf32, #tpu.memory_space<vmem>>, vector<128x32xf32>,
    return
  }
  func.func @transform_0(%arg0: i32) -> (i32, i32) {
    %c0_i32 = arith.constant 0 : i32
    %c0_i32_0 = arith.constant 0 : i32
    return %arg0, %c0_i32 : i32, i32
  }
  func.func @transform_1(%arg0: i32) -> (i32, i32) {
    %c0_i32 = arith.constant 0 : i32
    %c0_i32_0 = arith.constant 0 : i32
    return %arg0, %c0_i32 : i32, i32
  }
  func.func @transform_2(%arg0: i32) -> (i32, i32) {
    %c0_i32 = arith.constant 0 : i32
    %c0_i32_0 = arith.constant 0 : i32
    %c0_i32_1 = arith.constant 0 : i32
    return %c0_i32, %c0_i32_0 : i32, i32
  }
  func.func @transform_3(%arg0: i32) -> (i32, i32) {
    %c0_i32 = arith.constant 0 : i32
    %c0_i32_0 = arith.constant 0 : i32
    %c0_i32_1 = arith.constant 0 : i32
    return %c0_i32, %c0_i32_0 : i32, i32
  }
  func.func @transform_4(%arg0: i32) -> (i32, i32) {
    %c0_i32 = arith.constant 0 : i32
    %c0_i32_0 = arith.constant 0 : i32
    %c0_i32_1 = arith.constant 0 : i32
    return %c0_i32, %c0_i32_0 : i32, i32
  }
  func.func @transform_5(%arg0: i32) -> (i32, i32) {
    %c0_i32 = arith.constant 0 : i32
    %c0_i32_0 = arith.constant 0 : i32
    %c0_i32_1 = arith.constant 0 : i32
    return %c0_i32, %c0_i32_0 : i32, i32
  }
  func.func @transform_6(%arg0: i32) -> (i32, i32) {
    %c0_i32 = arith.constant 0 : i32
    %c0_i32_0 = arith.constant 0 : i32
    %c0_i32_1 = arith.constant 0 : i32
    return %c0_i32, %c0_i32_0 : i32, i32
  }
  func.func @transform_7(%arg0: i32) -> (i32, i32) {
    %c0_i32 = arith.constant 0 : i32
    %c0_i32_0 = arith.constant 0 : i32
    %c0_i32_1 = arith.constant 0 : i32
    return %c0_i32, %c0_i32_0 : i32, i32
  }
  func.func @transform_8(%arg0: i32) -> (i32, i32) {
    %c0_i32 = arith.constant 0 : i32
    %c0_i32_0 = arith.constant 0 : i32
    return %arg0, %c0_i32 : i32, i32
  }
}

</mosaic_0001>

<bundles_post_ra>
// kernel: tpu_custom_call.1
= control target key start
LH: loop header
LB: loop body
LE: loop exit
PB: predicated region body
PF: predicated region fallthrough
CT: control target
= control target key end

     0   :  { %vm109_vm0 = vcmask 261120   ;;  %v3282_v44 = vmov 0   ;;  %vm489_vm1 = vcmask 523264   ;;  %s4685_s2 = inlined_call_operand.vmem [shape: bf16[32,64], index: 2, kind: input, shape index: {}]   ;;  %s4686_s1 = inlined_call_operand.vmem [shape: bf16[128,32], index: 1, kind: input, shape index: {}]   ;;  %s4687_s4 = inlined_call_operand.vmem [shape: bf16[64,1024], index: 4, kind: input, shape index: {}]   ;;  %s4688_s3 = inlined_call_operand.vmem [shape: f32[1,64], index: 3, kind: input, shape index: {}]   ;;  %s4689_s0 = inlined_call_operand.vmem [shape: bf16[128,32], index: 0, kind: input, shape index: {}]   ;;  %s4690_s6 = inlined_call_operand.vmem [shape: bf16[32,1024], index: 6, kind: input, shape index: {}]   ;;  %s4691_s7 = inlined_call_operand.vmem [shape: bf16[1024,32], index: 7, kind: input, shape index: {}]   ;;  %s4692_s5 = inlined_call_operand.vmem [shape: f32[1,1024], index: 5, kind: input, shape index: {}]   ;;  %s4693_s8 = inlined_call_operand.vmem [shape: f32[128,32], index: 8, kind: output, shape index: {}]  }
   0x1   :  { %v3200_v0 = vld [vmem:[%s4685_s2] sm:$0xff]   ;;  %v3201_v1 = vld [vmem:[%s4685_s2 + $0x8] sm:$0xff]   ;;  %v3204_v4 = vld [vmem:[%s4686_s1 + $0x10] sm:$0xff]  }
   0x2   :  { %3175 = vmatprep.subr.bf16.mxu0 %v3200_v0  ;;  %v3202_v2 = vld [vmem:[%s4686_s1] sm:$0xff]   ;;  %3195 = vmatprep.subr.bf16.mxu1 %v3200_v0  ;;  %v3203_v3 = vld [vmem:[%s4686_s1 + $0x8] sm:$0xff]   ;;  %v3208_v7 = vld [vmem:[%s4686_s1 + $0x30] sm:$0xff]  }
   0x3   :  { %3176 = vmatpush3.bf16.msra.mxu0 %v3200_v0  ;;  %3197 = vmatpush3.bf16.msra.mxu1 %v3200_v0  ;;  %v3206_v5 = vld [vmem:[%s4686_s1 + $0x20] sm:$0xff]   ;;  %v3207_v6 = vld [vmem:[%s4686_s1 + $0x28] sm:$0xff]   ;;  %v3205_v22 = vld [vmem:[%s4686_s1 + $0x18] sm:$0xff]  }
   0x4   :  { %3177 = vmatprep.subr.bf16.mxu0 %v3201_v1  ;;  %3179 = vmatprep.mubr.msk.bf16.mxu0 %vm109_vm0, %v3202_v2  ;;  %v255_v8 = vld [vmem:[%s4687_s4] sm:$0xff]  ;;  %v256_v10 = vld [vmem:[%s4687_s4 + $0x8] sm:$0xff]  ;;  %v3209_v23 = vld [vmem:[%s4686_s1 + $0x38] sm:$0xff]  }
   0x5   :  { %3196 = vmatprep.subr.bf16.mxu1 %v3201_v1  ;;  %3187 = vmatprep.mubr.msk.bf16.mxu1 %vm109_vm0, %v3206_v5  ;;  %v259_v9 = vld [vmem:[%s4687_s4 + $0x20] sm:$0xff]  ;;  %v260_v13 = vld [vmem:[%s4687_s4 + $0x28] sm:$0xff]  ;;  %v3417_v42 = vld [vmem:[%s4687_s4 + $0x10] sm:$0xff] }
   0x6   :  { %v2725_v11 = vcombine.low %v255_v8, %v259_v9  ;;  %v2726_v12 = vcombine.high %v255_v8, %v259_v9  ;;  %v263_v14 = vld [vmem:[%s4687_s4 + $0x40] sm:$0xff]  ;;  %v2727_v16 = vcombine.low %v256_v10, %v260_v13  ;;  %v2728_v17 = vcombine.high %v256_v10, %v260_v13  ;;  %v264_v19 = vld [vmem:[%s4687_s4 + $0x48] sm:$0xff]  ;;  %v3422_v43 = vld [vmem:[%s4687_s4 + $0x30] sm:$0xff] }
   0x7   :  { %3178 = vmatpush3.bf16.msra.mxu0 %v3201_v1  ;;  %3198 = vmatpush3.bf16.msra.mxu1 %v3201_v1  ;;  %v267_v15 = vld [vmem:[%s4687_s4 + $0x60] sm:$0xff]  ;;  %v268_v20 = vld [vmem:[%s4687_s4 + $0x68] sm:$0xff]  ;;  %v2729_v45 = vcombine.low %v3417_v42, %v3422_v43  ;;  %v2730_v46 = vcombine.high %v3417_v42, %v3422_v43  ;;  %v3433_v47 = vld [vmem:[%s4687_s4 + $0x18] sm:$0xff] }
   0x8   :  { %v2734_v18 = vcombine.high %v263_v14, %v267_v15  ;;  %514 = vmatprep.subr.bf16.mxu1 %v2726_v12  ;;  %v2736_v21 = vcombine.high %v264_v19, %v268_v20  ;;  %627 = vmatprep.subr.bf16.mxu0 %v2728_v17  ;;  %v2733_v24 = vcombine.low %v263_v14, %v267_v15  ;;  %v271_v26 = vld [vmem:[%s4687_s4 + $0x80] sm:$0xff]  ;;  %v272_v28 = vld [vmem:[%s4687_s4 + $0x88] sm:$0xff]  ;;  %v3438_v48 = vld [vmem:[%s4687_s4 + $0x38] sm:$0xff] }
   0x9   :  { %v2735_v25 = vcombine.low %v264_v19, %v268_v20  ;;  %v275_v27 = vld [vmem:[%s4687_s4 + $0xa0] sm:$0xff]  ;;  %v276_v30 = vld [vmem:[%s4687_s4 + $0xa8] sm:$0xff]  ;;  %v2731_v49 = vcombine.low %v3433_v47, %v3438_v48  ;;  %v2732_v50 = vcombine.high %v3433_v47, %v3438_v48  ;;  %v3455_v60 = vld [vmem:[%s4687_s4 + $0x50] sm:$0xff] }
   0xa   :  { %3180 = vmatmul.mubr.msk.bf16.vlgmr.msra.gmra.mrb[0].mxu0 %vm109_vm0, %v3203_v3  ;;  %3188 = vmatmul.mubr.msk.bf16.vlgmr.msra.gmra.mrb[0].mxu1 %vm109_vm0, %v3207_v6  ;;  %v2742_v29 = vcombine.high %v271_v26, %v275_v27  ;;  %v2741_v31 = vcombine.low %v271_v26, %v275_v27  ;;  %v2743_v32 = vcombine.low %v272_v28, %v276_v30  ;;  %v279_v34 = vld [vmem:[%s4687_s4 + $0xc0] sm:$0xff]  ;;  %v280_v36 = vld [vmem:[%s4687_s4 + $0xc8] sm:$0xff]  ;;  %v3462_v1 = vld [vmem:[%s4687_s4 + $0x70] sm:$0xff] }
   0xb   :  { %3183 = vmatprep.mubr.msk.bf16.mxu0 %vm109_vm0, %v3204_v4  ;;  %3191 = vmatprep.mubr.msk.bf16.mxu1 %vm109_vm0, %v3208_v7  ;;  %v2744_v33 = vcombine.high %v272_v28, %v276_v30  ;;  %v283_v35 = vld [vmem:[%s4687_s4 + $0xe0] sm:$0xff]  ;;  %v284_v38 = vld [vmem:[%s4687_s4 + $0xe8] sm:$0xff]  ;;  %v3467_v2 = vld [vmem:[%s4687_s4 + $0x58] sm:$0xff] }
   0xc   :  { %515 = vmatpush1.bf16.msra.mxu1 %v2725_v11  ;;  %628 = vmatpush1.bf16.msra.mxu0 %v2727_v16  ;;  %v2750_v37 = vcombine.high %v279_v34, %v283_v35  ;;  %v2749_v39 = vcombine.low %v279_v34, %v283_v35  ;;  %v2751_v40 = vcombine.low %v280_v36, %v284_v38  ;;  %v3447_v51 = vld [vmem:[%s4688_s3] ss:$0 sm:$0xff]  ;;  %v3472_v3 = vld [vmem:[%s4687_s4 + $0x78] sm:$0xff]  ;;  %v3480_v10 = vld [vmem:[%s4687_s4 + $0x90] sm:$0xff] }
   0xd   :  { %516 = vmatprep.subr.bf16.mxu1 %v2734_v18  ;;  %629 = vmatprep.subr.bf16.mxu0 %v2736_v21  ;;  %v2752_v41 = vcombine.high %v280_v36, %v284_v38  ;;  %v3485_v11 = vld [vmem:[%s4687_s4 + $0xb0] sm:$0xff]  ;;  %v3490_v16 = vld [vmem:[%s4687_s4 + $0x98] sm:$0xff]  ;;  %v2737_v21 = vcombine.low %v3455_v60, %v3462_v1  ;;  %v2739_v26 = vcombine.low %v3467_v2, %v3472_v3 }
   0xe   :  { %v3495_v17 = vld [vmem:[%s4687_s4 + $0xb8] sm:$0xff] }
  0x10   :  { %517 = vmatpush1.bf16.msra.mxu1 %v2733_v24  ;;  %630 = vmatpush1.bf16.msra.mxu0 %v2735_v25  ;;  %v2738_v25 = vcombine.high %v3455_v60, %v3462_v1  ;;  %v2745_v60 = vcombine.low %v3480_v10, %v3485_v11 }
  0x11   :  { %518 = vmatprep.subr.bf16.mxu1 %v2742_v29  ;;  %631 = vmatprep.subr.bf16.mxu0 %v2744_v33 }
  0x12   :  { %3184 = vmatmul.mubr.msk.bf16.gmra.mrb[4].mxu0 %vm109_vm0, %v3205_v22  ;;  %3192 = vmatmul.mubr.msk.bf16.gmra.mrb[4].mxu1 %vm109_vm0, %v3209_v23 }
  0x13   :  { %546 = vmatprep.mubr.bf16.mxu1 %v3282_v44  ;;  %659 = vmatprep.mubr.bf16.mxu0 %v3282_v44 }
  0x14   :  { %519 = vmatpush1.bf16.msra.mxu1 %v2741_v31  ;;  %632 = vmatpush1.bf16.msra.mxu0 %v2743_v32  ;;  %v2740_v31 = vcombine.high %v3467_v2, %v3472_v3  ;;  %v2746_v32 = vcombine.high %v3480_v10, %v3485_v11  ;;  %v982_v3 = vld [vmem:[%s4690_s6] sm:$0xff] }
  0x15   :  { %520 = vmatprep.subr.bf16.mxu1 %v2750_v37  ;;  %633 = vmatprep.subr.bf16.mxu0 %v2752_v41  ;;  %v2748_v37 = vcombine.high %v3490_v16, %v3495_v17  ;;  %v990_v11 = vld [vmem:[%s4690_s6 + $0x40] sm:$0xff] }
  0x18   :  { %521 = vmatpush1.bf16.msra.mxu1 %v2749_v39  ;;  %634 = vmatpush1.bf16.msra.mxu0 %v2751_v40 }
  0x19   :  { %740 = vmatprep.subr.bf16.mxu1 %v2730_v46  ;;  %853 = vmatprep.subr.bf16.mxu0 %v2732_v50 }
  0xdd   :  { %v3181_v52 = vpop.f32.mrb[0].mxu0  ;;  %v3189_v53 = vpop.f32.mrb[0].mxu1 }
  0xde   :  { %v177_v54 = vadd.f32 %v3181_v52, %v3447_v51  ;;  %v168_v55 = vpop.f32.mrb[1].mxu0  ;;  %v209_v56 = vadd.f32 %v3189_v53, %v3447_v51  ;;  %v200_v57 = vpop.f32.mrb[1].mxu1 }
  0xdf   :  { %v169_v58 = vadd.f32 %v3447_v51, %v168_v55  ;;  %v3182_v59 = vpop.f32.mrb[2].mxu0  ;;  %v201_v61 = vadd.f32 %v3447_v51, %v200_v57  ;;  %v3190_v62 = vpop.f32.mrb[2].mxu1  ;;  %v285_v57 = vld [vmem:[%s4687_s4 + $0xf0] sm:$0xff] }
  0xe0   :  { %v180_v63 = vadd.f32 %v3182_v59, %v3447_v51  ;;  %v171_v0 = vpop.f32.mrb[3].mxu0  ;;  %v241_v4 = vmax.f32 %v209_v56, 0.0  ;;  %v212_v5 = vadd.f32 %v3190_v62, %v3447_v51  ;;  %v203_v6 = vpop.f32.mrb[3].mxu1  ;;  %v233_v12 = vmax.f32 %v177_v54, 0.0 }
  0xe1   :  { %v172_v7 = vadd.f32 %v3447_v51, %v171_v0  ;;  %v239_v8 = vmax.f32 %v201_v61, 0.0  ;;  %v204_v9 = vadd.f32 %v3447_v51, %v203_v6  ;;  %v231_v13 = vmax.f32 %v169_v58, 0.0  ;;  %v282_v58 = vld [vmem:[%s4687_s4 + $0xd8] sm:$0xff]  ;;  %v987_v6 = vld [vmem:[%s4690_s6 + $0x28] sm:$0xff] }
  0xe2   :  { %v234_v14 = vmax.f32 %v180_v63, 0.0  ;;  %v242_v15 = vmax.f32 %v212_v5, 0.0  ;;  %v2747_v63 = vcombine.low %v3490_v16, %v3495_v17  ;;  %v983_v5 = vld [vmem:[%s4690_s6 + $0x8] sm:$0xff]  ;;  %v984_v17 = vld [vmem:[%s4690_s6 + $0x10] sm:$0xff] }
  0xe3   :  { %v232_v18 = vmax.f32 %v172_v7, 0.0  ;;  %v240_v19 = vmax.f32 %v204_v9, 0.0  ;;  %v2800_v10 = vcombine.high %v983_v5, %v987_v6  ;;  %v2799_v16 = vcombine.low %v983_v5, %v987_v6  ;;  %v3241_v5 = vld [vmem:[%s4691_s7 + $0xa8] sm:$0xff]  }
  0xe4   :  { %v3497_v20 = vpack.c.bf16 %v234_v14, %v233_v12  ;;  %v3501_v22 = vpack.c.bf16 %v242_v15, %v241_v4  ;;  %v986_v4 = vld [vmem:[%s4690_s6 + $0x20] sm:$0xff]  ;;  %v995_v14 = vld [vmem:[%s4690_s6 + $0x68] sm:$0xff] }
  0xe5   :  { %v3503_v23 = vpack.c.bf16 %v232_v18, %v231_v13  ;;  %v3185_v24 = vpop.f32.mrb[4].mxu0  ;;  %v3509_v27 = vpack.c.bf16 %v240_v19, %v239_v8  ;;  %v3193_v28 = vpop.f32.mrb[4].mxu1  ;;  %v2798_v9 = vcombine.high %v982_v3, %v986_v4  ;;  %v994_v12 = vld [vmem:[%s4690_s6 + $0x60] sm:$0xff]  ;;  %v991_v13 = vld [vmem:[%s4690_s6 + $0x48] sm:$0xff]  ;;  %v2797_v15 = vcombine.low %v982_v3, %v986_v4 }
  0xe6   :  { %v193_v29 = vadd.f32 %v3185_v24, %v3447_v51  ;;  %v184_v30 = vpop.f32.mrb[5].mxu0  ;;  %v225_v33 = vadd.f32 %v3193_v28, %v3447_v51  ;;  %v216_v34 = vpop.f32.mrb[5].mxu1  ;;  %v2806_v18 = vcombine.high %v990_v11, %v994_v12  ;;  %v2808_v19 = vcombine.high %v991_v13, %v995_v14  ;;  %v985_v24 = vld [vmem:[%s4690_s6 + $0x18] sm:$0xff]  ;;  %v3240_v3 = vld [vmem:[%s4691_s7 + $0xe8] sm:$0xff]  }
  0xe7   :  { %2757 = vmatmul.mubr.msk.bf16.vlgmr.msra.gmra.mrb[8].mxu1 %vm489_vm1, %v3503_v23  ;;  %2765 = vmatmul.mubr.msk.bf16.vlgmr.msra.gmra.mrb[8].mxu0 %vm489_vm1, %v3503_v23  ;;  %v185_v35 = vadd.f32 %v3447_v51, %v184_v30  ;;  %v3186_v36 = vpop.f32.mrb[6].mxu0  ;;  %v217_v38 = vadd.f32 %v3447_v51, %v216_v34  ;;  %v3194_v39 = vpop.f32.mrb[6].mxu1  ;;  %v2807_v28 = vcombine.low %v991_v13, %v995_v14  ;;  %v3239_v4 = vld [vmem:[%s4691_s7 + $0x28] sm:$0xff]  }
  0xe8   :  { %741 = vmatpush1.bf16.msra.mxu1 %v2729_v45  ;;  %854 = vmatpush1.bf16.msra.mxu0 %v2731_v49  ;;  %v237_v40 = vmax.f32 %v193_v29, 0.0  ;;  %v196_v41 = vadd.f32 %v3186_v36, %v3447_v51  ;;  %v187_v46 = vpop.f32.mrb[7].mxu0  ;;  %v245_v47 = vmax.f32 %v225_v33, 0.0  ;;  %v228_v48 = vadd.f32 %v3194_v39, %v3447_v51  ;;  %v219_v50 = vpop.f32.mrb[7].mxu1  ;;  %v281_v49 = vld [vmem:[%s4687_s4 + $0xd0] sm:$0xff] }
  0xe9   :  { %v235_v52 = vmax.f32 %v185_v35, 0.0  ;;  %v188_v53 = vadd.f32 %v3447_v51, %v187_v46  ;;  %556 = vmatprep.mubr.bf16.mxu1 %v3282_v44  ;;  %669 = vmatprep.mubr.bf16.mxu0 %v3282_v44  ;;  %v243_v54 = vmax.f32 %v217_v38, 0.0  ;;  %v220_v42 = vadd.f32 %v3447_v51, %v219_v50  ;;  %v286_v51 = vld [vmem:[%s4687_s4 + $0xf8] sm:$0xff]  ;;  %v3710_v38 = vld [vmem:[%s4689_s0 + $0x8] sm:$0xff]   ;;  %v3721_v39 = vld [vmem:[%s4689_s0 + $0x10] sm:$0xff]  }
  0xea   :  { %v238_v43 = vmax.f32 %v196_v41, 0.0  ;;  %742 = vmatprep.subr.bf16.mxu1 %v2738_v25  ;;  %855 = vmatprep.subr.bf16.mxu0 %v2740_v31  ;;  %v246_v45 = vmax.f32 %v228_v48, 0.0  ;;  %v2754_v1 = vcombine.high %v281_v49, %v285_v57  ;;  %v2756_v2 = vcombine.high %v282_v58, %v286_v51  ;;  %v989_v25 = vld [vmem:[%s4690_s6 + $0x38] sm:$0xff]  ;;  %v3743_v41 = vld [vmem:[%s4689_s0 + $0x20] sm:$0xff]   ;;  %v3760_v48 = vld [vmem:[%s4689_s0 + $0x28] sm:$0xff]  }
  0xeb   :  { %v236_v55 = vmax.f32 %v188_v53, 0.0  ;;  %v244_v56 = vmax.f32 %v220_v42, 0.0  ;;  %v2753_v7 = vcombine.low %v281_v49, %v285_v57  ;;  %v2755_v8 = vcombine.low %v282_v58, %v286_v51  ;;  %v997_v31 = vld [vmem:[%s4690_s6 + $0x78] sm:$0xff]  ;;  %v3218_v46 = vld [vmem:[%s4691_s7 + $0x40] sm:$0xff]   ;;  %v3771_v50 = vld [vmem:[%s4689_s0 + $0x30] sm:$0xff]  }
  0xec   :  { %v3546_v59 = vpack.c.bf16 %v238_v43, %v237_v40  ;;  %743 = vmatpush1.bf16.msra.mxu1 %v2737_v21  ;;  %856 = vmatpush1.bf16.msra.mxu0 %v2739_v26  ;;  %v3550_v61 = vpack.c.bf16 %v246_v45, %v245_v47  ;;  %v988_v21 = vld [vmem:[%s4690_s6 + $0x30] sm:$0xff]  ;;  %v2805_v26 = vcombine.low %v990_v11, %v994_v12  ;;  %v3732_v40 = vld [vmem:[%s4689_s0 + $0x18] sm:$0xff]   ;;  %v3220_v47 = vld [vmem:[%s4691_s7 + $0xc0] sm:$0xff]  }
  0xed   :  { %v3552_v62 = vpack.c.bf16 %v236_v55, %v235_v52  ;;  %744 = vmatprep.subr.bf16.mxu1 %v2746_v32  ;;  %857 = vmatprep.subr.bf16.mxu0 %v2748_v37  ;;  %v3556_v0 = vpack.c.bf16 %v244_v56, %v243_v54  ;;  %v2802_v29 = vcombine.high %v984_v17, %v988_v21  ;;  %v3782_v52 = vld [vmem:[%s4689_s0 + $0x38] sm:$0xff]   ;;  %v3219_v53 = vld [vmem:[%s4691_s7] sm:$0xff]   ;;  %v3222_v42 = vld [vmem:[%s4691_s7 + $0x48] sm:$0xff]  }
  0xee   :  { %v2804_v30 = vcombine.high %v985_v24, %v989_v25  ;;  %v2801_v32 = vcombine.low %v984_v17, %v988_v21  ;;  %v2803_v33 = vcombine.low %v985_v24, %v989_v25  ;;  %v3221_v54 = vld [vmem:[%s4691_s7 + $0x80] sm:$0xff]   ;;  %v3224_v43 = vld [vmem:[%s4691_s7 + $0xc8] sm:$0xff]   ;;  %v3226_v55 = vld [vmem:[%s4691_s7 + $0x50] sm:$0xff]  }
  0xef   :  { %2758 = vmatmul.mubr.msk.bf16.gmra.mrb[12].mxu1 %vm489_vm1, %v3497_v20  ;;  %2766 = vmatmul.mubr.msk.bf16.gmra.mrb[12].mxu0 %vm489_vm1, %v3497_v20  ;;  %v3223_v45 = vld [vmem:[%s4691_s7 + $0x8] sm:$0xff]   ;;  %v3228_v56 = vld [vmem:[%s4691_s7 + $0xd0] sm:$0xff]   ;;  %v3230_v51 = vld [vmem:[%s4691_s7 + $0x58] sm:$0xff]  }
  0xf0   :  { %566 = vmatprep.mubr.bf16.mxu1 %v3282_v44  ;;  %679 = vmatprep.mubr.bf16.mxu0 %v3282_v44  ;;  %v3225_v49 = vld [vmem:[%s4691_s7 + $0x88] sm:$0xff]   ;;  %v3227_v57 = vld [vmem:[%s4691_s7 + $0x10] sm:$0xff]   ;;  %v3247_v21 = vld [vmem:[%s4691_s7 + $0x38] sm:$0xff]  }
  0xf1   :  { %745 = vmatpush1.bf16.msra.mxu1 %v2745_v60  ;;  %858 = vmatpush1.bf16.msra.mxu0 %v2747_v63  ;;  %v3229_v58 = vld [vmem:[%s4691_s7 + $0x90] sm:$0xff]   ;;  %v3231_v60 = vld [vmem:[%s4691_s7 + $0x18] sm:$0xff]   ;;  %v3236_v63 = vld [vmem:[%s4691_s7 + $0xe0] sm:$0xff]  }
  0xf2   :  { %746 = vmatprep.subr.bf16.mxu1 %v2754_v1  ;;  %859 = vmatprep.subr.bf16.mxu0 %v2756_v2  ;;  %v3237_v1 = vld [vmem:[%s4691_s7 + $0xa0] sm:$0xff]   ;;  %v3238_v2 = vld [vmem:[%s4691_s7 + $0x68] sm:$0xff]   ;;  %v3245_v17 = vld [vmem:[%s4691_s7 + $0xb0] sm:$0xff]  }
  0xf3   :  { %v3249_v24 = vld [vmem:[%s4691_s7 + $0xb8] sm:$0xff]  }
  0xf5   :  { %747 = vmatpush1.bf16.msra.mxu1 %v2753_v7  ;;  %860 = vmatpush1.bf16.msra.mxu0 %v2755_v8  ;;  %v3242_v8 = vld [vmem:[%s4691_s7 + $0x70] sm:$0xff]  }
  0xf6   :  { %1142 = vmatprep.subr.bf16.mxu1 %v2798_v9  ;;  %1255 = vmatprep.subr.bf16.mxu0 %v2800_v10  ;;  %v3244_v9 = vld [vmem:[%s4691_s7 + $0xf0] sm:$0xff]  }
  0xf7   :  { %2759 = vmatmul.mubr.msk.bf16.gmra.mrb[16].mxu1 %vm489_vm1, %v3552_v62  ;;  %2767 = vmatmul.mubr.msk.bf16.gmra.mrb[16].mxu0 %vm489_vm1, %v3552_v62 }
  0xf8   :  { %576 = vmatprep.mubr.bf16.mxu1 %v3282_v44  ;;  %689 = vmatprep.mubr.bf16.mxu0 %v3282_v44 }
  0xff   :  { %2760 = vmatmul.mubr.msk.bf16.gmra.mrb[20].mxu1 %vm489_vm1, %v3546_v59  ;;  %2768 = vmatmul.mubr.msk.bf16.gmra.mrb[20].mxu0 %vm489_vm1, %v3546_v59 }
 0x100   :  { %586 = vmatprep.mubr.bf16.mxu1 %v3282_v44  ;;  %699 = vmatprep.mubr.bf16.mxu0 %v3282_v44 }
 0x107   :  { %2761 = vmatmul.mubr.msk.bf16.gmra.mrb[24].mxu1 %vm489_vm1, %v3509_v27  ;;  %2769 = vmatmul.mubr.msk.bf16.gmra.mrb[24].mxu0 %vm489_vm1, %v3509_v27 }
 0x108   :  { %596 = vmatprep.mubr.bf16.mxu1 %v3282_v44  ;;  %709 = vmatprep.mubr.bf16.mxu0 %v3282_v44 }
 0x10f   :  { %2762 = vmatmul.mubr.msk.bf16.gmra.mrb[28].mxu1 %vm489_vm1, %v3501_v22  ;;  %2770 = vmatmul.mubr.msk.bf16.gmra.mrb[28].mxu0 %vm489_vm1, %v3501_v22 }
 0x110   :  { %606 = vmatprep.mubr.bf16.mxu1 %v3282_v44  ;;  %719 = vmatprep.mubr.bf16.mxu0 %v3282_v44 }
 0x117   :  { %2763 = vmatmul.mubr.msk.bf16.gmra.mrb[32].mxu1 %vm489_vm1, %v3556_v0  ;;  %2771 = vmatmul.mubr.msk.bf16.gmra.mrb[32].mxu0 %vm489_vm1, %v3556_v0 }
 0x118   :  { %616 = vmatprep.mubr.bf16.mxu1 %v3282_v44  ;;  %729 = vmatprep.mubr.bf16.mxu0 %v3282_v44 }
 0x11f   :  { %2764 = vmatmul.mubr.msk.bf16.gmra.mrb[36].mxu1 %vm489_vm1, %v3550_v61  ;;  %2772 = vmatmul.mubr.msk.bf16.gmra.mrb[36].mxu0 %vm489_vm1, %v3550_v61 }
 0x120   :  { %772 = vmatprep.mubr.bf16.mxu1 %v3282_v44  ;;  %885 = vmatprep.mubr.bf16.mxu0 %v3282_v44 }
 0x127   :  { %2773 = vmatmul.mubr.msk.bf16.vlgmr.msra.gmra.mrb[40].mxu1 %vm489_vm1, %v3503_v23  ;;  %2781 = vmatmul.mubr.msk.bf16.vlgmr.msra.gmra.mrb[40].mxu0 %vm489_vm1, %v3503_v23  ;;  %v996_v23 = vld [vmem:[%s4690_s6 + $0x70] sm:$0xff] }
 0x128   :  { %1143 = vmatpush1.bf16.msra.mxu1 %v2797_v15  ;;  %1256 = vmatpush1.bf16.msra.mxu0 %v2799_v16  ;;  %v3243_v16 = vld [vmem:[%s4691_s7 + $0x30] sm:$0xff]  }
 0x129   :  { %782 = vmatprep.mubr.bf16.mxu1 %v3282_v44  ;;  %895 = vmatprep.mubr.bf16.mxu0 %v3282_v44 }
 0x12a   :  { %1144 = vmatprep.subr.bf16.mxu1 %v2806_v18  ;;  %1257 = vmatprep.subr.bf16.mxu0 %v2808_v19  ;;  %v3246_v18 = vld [vmem:[%s4691_s7 + $0x78] sm:$0xff]  }
 0x12b   :  { %v3248_v19 = vld [vmem:[%s4691_s7 + $0xf8] sm:$0xff]  }
 0x12c   :  { %1145 = vmatpush1.bf16.msra.mxu1 %v2805_v26  ;;  %1258 = vmatpush1.bf16.msra.mxu0 %v2807_v28 }
 0x12d   :  { %1368 = vmatprep.subr.bf16.mxu1 %v2802_v29  ;;  %1481 = vmatprep.subr.bf16.mxu0 %v2804_v30  ;;  %v3250_v30 = vld [vmem:[%s4691_s7 + $0x140] sm:$0xff]  }
 0x12f   :  { %2774 = vmatmul.mubr.msk.bf16.gmra.mrb[44].mxu1 %vm489_vm1, %v3497_v20  ;;  %2782 = vmatmul.mubr.msk.bf16.gmra.mrb[44].mxu0 %vm489_vm1, %v3497_v20  ;;  %v3687_v20 = vld [vmem:[%s4689_s0] sm:$0xff]  }
 0x130   :  { %792 = vmatprep.mubr.bf16.mxu1 %v3282_v44  ;;  %905 = vmatprep.mubr.bf16.mxu0 %v3282_v44 }
 0x137   :  { %2775 = vmatmul.mubr.msk.bf16.gmra.mrb[48].mxu1 %vm489_vm1, %v3552_v62  ;;  %2783 = vmatmul.mubr.msk.bf16.gmra.mrb[48].mxu0 %vm489_vm1, %v3552_v62  ;;  %v3234_v62 = vld [vmem:[%s4691_s7 + $0x60] sm:$0xff]  }
 0x138   :  { %802 = vmatprep.mubr.bf16.mxu1 %v3282_v44  ;;  %915 = vmatprep.mubr.bf16.mxu0 %v3282_v44 }
 0x13f   :  { %2776 = vmatmul.mubr.msk.bf16.gmra.mrb[52].mxu1 %vm489_vm1, %v3546_v59  ;;  %2784 = vmatmul.mubr.msk.bf16.gmra.mrb[52].mxu0 %vm489_vm1, %v3546_v59  ;;  %v3232_v59 = vld [vmem:[%s4691_s7 + $0xd8] sm:$0xff]  }
 0x140   :  { %812 = vmatprep.mubr.bf16.mxu1 %v3282_v44  ;;  %925 = vmatprep.mubr.bf16.mxu0 %v3282_v44 }
 0x147   :  { %2777 = vmatmul.mubr.msk.bf16.gmra.mrb[56].mxu1 %vm489_vm1, %v3509_v27  ;;  %2785 = vmatmul.mubr.msk.bf16.gmra.mrb[56].mxu0 %vm489_vm1, %v3509_v27  ;;  %v993_v27 = vld [vmem:[%s4690_s6 + $0x58] sm:$0xff] }
 0x148   :  { %822 = vmatprep.mubr.bf16.mxu1 %v3282_v44  ;;  %935 = vmatprep.mubr.bf16.mxu0 %v3282_v44  ;;  %v2812_v35 = vcombine.high %v993_v27, %v997_v31  ;;  %v2811_v37 = vcombine.low %v993_v27, %v997_v31  ;;  %v3252_v31 = vld [vmem:[%s4691_s7 + $0x1c0] sm:$0xff]  }
 0x14f   :  { %2778 = vmatmul.mubr.msk.bf16.gmra.mrb[60].mxu1 %vm489_vm1, %v3501_v22  ;;  %2786 = vmatmul.mubr.msk.bf16.gmra.mrb[60].mxu0 %vm489_vm1, %v3501_v22  ;;  %v992_v22 = vld [vmem:[%s4690_s6 + $0x50] sm:$0xff] }
 0x150   :  { %832 = vmatprep.mubr.bf16.mxu1 %v3282_v44  ;;  %945 = vmatprep.mubr.bf16.mxu0 %v3282_v44  ;;  %v2810_v34 = vcombine.high %v992_v22, %v996_v23  ;;  %v2809_v36 = vcombine.low %v992_v22, %v996_v23 }
 0x157   :  { %2779 = vmatmul.mubr.msk.bf16.gmra.mrb[64].mxu1 %vm489_vm1, %v3556_v0  ;;  %2787 = vmatmul.mubr.msk.bf16.gmra.mrb[64].mxu0 %vm489_vm1, %v3556_v0  ;;  %v3235_v0 = vld [vmem:[%s4691_s7 + $0x20] sm:$0xff]  }
 0x158   :  { %842 = vmatprep.mubr.bf16.mxu1 %v3282_v44  ;;  %955 = vmatprep.mubr.bf16.mxu0 %v3282_v44 }
 0x15f   :  { %2780 = vmatmul.mubr.msk.bf16.gmra.mrb[68].mxu1 %vm489_vm1, %v3550_v61  ;;  %2788 = vmatmul.mubr.msk.bf16.gmra.mrb[68].mxu0 %vm489_vm1, %v3550_v61  ;;  %v3233_v61 = vld [vmem:[%s4691_s7 + $0x98] sm:$0xff]  }
 0x160   :  { %1174 = vmatprep.mubr.bf16.mxu1 %v3282_v44  ;;  %1287 = vmatprep.mubr.bf16.mxu0 %v3282_v44 }
 0x167   :  { %2813 = vmatmul.mubr.msk.bf16.vlgmr.msra.gmra.mrb[72].mxu1 %vm109_vm0, %v3687_v20  ;;  %2821 = vmatmul.mubr.msk.bf16.vlgmr.msra.gmra.mrb[72].mxu0 %vm109_vm0, %v3687_v20 }
 0x168   :  { %1369 = vmatpush1.bf16.msra.mxu1 %v2801_v32  ;;  %1482 = vmatpush1.bf16.msra.mxu0 %v2803_v33 }
 0x169   :  { %1184 = vmatprep.mubr.bf16.mxu1 %v3282_v44  ;;  %1297 = vmatprep.mubr.bf16.mxu0 %v3282_v44 }
 0x16a   :  { %1370 = vmatprep.subr.bf16.mxu1 %v2810_v34  ;;  %1483 = vmatprep.subr.bf16.mxu0 %v2812_v35 }
 0x16c   :  { %1371 = vmatpush1.bf16.msra.mxu1 %v2809_v36  ;;  %1484 = vmatpush1.bf16.msra.mxu0 %v2811_v37 }
 0x16d   :  { %2919 = vmatprep.subr.bf16.mxu1 %v3218_v46  ;;  %2983 = vmatprep.subr.bf16.mxu0 %v3220_v47 }
 0x16f   :  { %2814 = vmatmul.mubr.msk.bf16.gmra.mrb[76].mxu1 %vm109_vm0, %v3710_v38  ;;  %2822 = vmatmul.mubr.msk.bf16.gmra.mrb[76].mxu0 %vm109_vm0, %v3710_v38 }
 0x170   :  { %1194 = vmatprep.mubr.bf16.mxu1 %v3282_v44  ;;  %1307 = vmatprep.mubr.bf16.mxu0 %v3282_v44 }
 0x177   :  { %2815 = vmatmul.mubr.msk.bf16.gmra.mrb[80].mxu1 %vm109_vm0, %v3721_v39  ;;  %2823 = vmatmul.mubr.msk.bf16.gmra.mrb[80].mxu0 %vm109_vm0, %v3721_v39 }
 0x178   :  { %1204 = vmatprep.mubr.bf16.mxu1 %v3282_v44  ;;  %1317 = vmatprep.mubr.bf16.mxu0 %v3282_v44 }
 0x17f   :  { %2816 = vmatmul.mubr.msk.bf16.gmra.mrb[84].mxu1 %vm109_vm0, %v3732_v40  ;;  %2824 = vmatmul.mubr.msk.bf16.gmra.mrb[84].mxu0 %vm109_vm0, %v3732_v40 }
 0x180   :  { %1214 = vmatprep.mubr.bf16.mxu1 %v3282_v44  ;;  %1327 = vmatprep.mubr.bf16.mxu0 %v3282_v44 }
 0x187   :  { %2817 = vmatmul.mubr.msk.bf16.gmra.mrb[88].mxu1 %vm109_vm0, %v3743_v41  ;;  %2825 = vmatmul.mubr.msk.bf16.gmra.mrb[88].mxu0 %vm109_vm0, %v3743_v41 }
 0x188   :  { %1224 = vmatprep.mubr.bf16.mxu1 %v3282_v44  ;;  %1337 = vmatprep.mubr.bf16.mxu0 %v3282_v44 }
 0x18f   :  { %2818 = vmatmul.mubr.msk.bf16.gmra.mrb[92].mxu1 %vm109_vm0, %v3760_v48  ;;  %2826 = vmatmul.mubr.msk.bf16.gmra.mrb[92].mxu0 %vm109_vm0, %v3760_v48 }
 0x190   :  { %1234 = vmatprep.mubr.bf16.mxu1 %v3282_v44  ;;  %1347 = vmatprep.mubr.bf16.mxu0 %v3282_v44 }
 0x197   :  { %2819 = vmatmul.mubr.msk.bf16.gmra.mrb[96].mxu1 %vm109_vm0, %v3771_v50  ;;  %2827 = vmatmul.mubr.msk.bf16.gmra.mrb[96].mxu0 %vm109_vm0, %v3771_v50 }
 0x198   :  { %1244 = vmatprep.mubr.bf16.mxu1 %v3282_v44  ;;  %1357 = vmatprep.mubr.bf16.mxu0 %v3282_v44 }
 0x19f   :  { %2820 = vmatmul.mubr.msk.bf16.gmra.mrb[100].mxu1 %vm109_vm0, %v3782_v52  ;;  %2828 = vmatmul.mubr.msk.bf16.gmra.mrb[100].mxu0 %vm109_vm0, %v3782_v52 }
 0x1a0   :  { %1400 = vmatprep.mubr.bf16.mxu1 %v3282_v44  ;;  %1513 = vmatprep.mubr.bf16.mxu0 %v3282_v44 }
 0x1a7   :  { %2829 = vmatmul.mubr.msk.bf16.vlgmr.msra.gmra.mrb[104].mxu1 %vm109_vm0, %v3687_v20  ;;  %2837 = vmatmul.mubr.msk.bf16.vlgmr.msra.gmra.mrb[104].mxu0 %vm109_vm0, %v3687_v20 }
 0x1a8   :  { %1410 = vmatprep.mubr.bf16.mxu1 %v3282_v44  ;;  %1523 = vmatprep.mubr.bf16.mxu0 %v3282_v44 }
 0x1a9   :  { %2920 = vmatpush3.bf16.msra.mxu1 %v3219_v53  ;;  %2984 = vmatpush3.bf16.msra.mxu0 %v3221_v54 }
 0x1aa   :  { %2921 = vmatprep.subr.bf16.mxu1 %v3222_v42  ;;  %2985 = vmatprep.subr.bf16.mxu0 %v3224_v43 }
 0x1ad   :  { %2922 = vmatpush3.bf16.msra.mxu1 %v3223_v45  ;;  %2986 = vmatpush3.bf16.msra.mxu0 %v3225_v49 }
 0x1ae   :  { %2923 = vmatprep.subr.bf16.mxu1 %v3226_v55  ;;  %2987 = vmatprep.subr.bf16.mxu0 %v3228_v56 }
 0x1af   :  { %2830 = vmatmul.mubr.msk.bf16.gmra.mrb[108].mxu1 %vm109_vm0, %v3710_v38  ;;  %2838 = vmatmul.mubr.msk.bf16.gmra.mrb[108].mxu0 %vm109_vm0, %v3710_v38 }
 0x1b0   :  { %1420 = vmatprep.mubr.bf16.mxu1 %v3282_v44  ;;  %1533 = vmatprep.mubr.bf16.mxu0 %v3282_v44 }
 0x1b1   :  { %2924 = vmatpush3.bf16.msra.mxu1 %v3227_v57  ;;  %2988 = vmatpush3.bf16.msra.mxu0 %v3229_v58 }
 0x1b2   :  { %2925 = vmatprep.subr.bf16.mxu1 %v3230_v51  ;;  %2989 = vmatprep.subr.bf16.mxu0 %v3232_v59 }
 0x1b5   :  { %2926 = vmatpush3.bf16.msra.mxu1 %v3231_v60  ;;  %2990 = vmatpush3.bf16.msra.mxu0 %v3233_v61 }
 0x1b6   :  { %2927 = vmatprep.subr.bf16.mxu1 %v3234_v62  ;;  %2991 = vmatprep.subr.bf16.mxu0 %v3236_v63 }
 0x1b7   :  { %2831 = vmatmul.mubr.msk.bf16.gmra.mrb[112].mxu1 %vm109_vm0, %v3721_v39  ;;  %2839 = vmatmul.mubr.msk.bf16.gmra.mrb[112].mxu0 %vm109_vm0, %v3721_v39 }
 0x1b8   :  { %1430 = vmatprep.mubr.bf16.mxu1 %v3282_v44  ;;  %1543 = vmatprep.mubr.bf16.mxu0 %v3282_v44 }
 0x1b9   :  { %2928 = vmatpush3.bf16.msra.mxu1 %v3235_v0  ;;  %2992 = vmatpush3.bf16.msra.mxu0 %v3237_v1 }
 0x1ba   :  { %v3874_v6 = vpop.f32.mrb[8].mxu1  ;;  %v3876_v7 = vpop.f32.mrb[8].mxu0  ;;  %2929 = vmatprep.subr.bf16.mxu1 %v3238_v2  ;;  %2993 = vmatprep.subr.bf16.mxu0 %v3240_v3 }
 0x1bb   :  { %v3884_v10 = vpop.f32.mrb[9].mxu1  ;;  %v3886_v11 = vpop.f32.mrb[9].mxu0 }
 0x1bc   :  { %v3888_v12 = vpop.f32.mrb[10].mxu1  ;;  %v3890_v13 = vpop.f32.mrb[10].mxu0 }
 0x1bd   :  { %v3892_v14 = vpop.f32.mrb[11].mxu1  ;;  %v3894_v15 = vpop.f32.mrb[11].mxu0  ;;  %2930 = vmatpush3.bf16.msra.mxu1 %v3239_v4  ;;  %2994 = vmatpush3.bf16.msra.mxu0 %v3241_v5 }
 0x1be   :  { %2931 = vmatprep.subr.bf16.mxu1 %v3242_v8  ;;  %2995 = vmatprep.subr.bf16.mxu0 %v3244_v9 }
 0x1bf   :  { %2832 = vmatmul.mubr.msk.bf16.gmra.mrb[116].mxu1 %vm109_vm0, %v3732_v40  ;;  %2840 = vmatmul.mubr.msk.bf16.gmra.mrb[116].mxu0 %vm109_vm0, %v3732_v40 }
 0x1c0   :  { %1440 = vmatprep.mubr.bf16.mxu1 %v3282_v44  ;;  %1553 = vmatprep.mubr.bf16.mxu0 %v3282_v44 }
 0x1c1   :  { %2932 = vmatpush3.bf16.msra.mxu1 %v3243_v16  ;;  %2996 = vmatpush3.bf16.msra.mxu0 %v3245_v17 }
 0x1c2   :  { %v3920_v25 = vpop.f32.mrb[12].mxu1  ;;  %v3922_v26 = vpop.f32.mrb[12].mxu0  ;;  %2933 = vmatprep.subr.bf16.mxu1 %v3246_v18  ;;  %2997 = vmatprep.subr.bf16.mxu0 %v3248_v19 }
 0x1c3   :  { %v3924_v28 = vpop.f32.mrb[13].mxu1  ;;  %v3926_v29 = vpop.f32.mrb[13].mxu0 }
 0x1c4   :  { %v3931_v20 = vpop.f32.mrb[14].mxu1  ;;  %v3933_v22 = vpop.f32.mrb[14].mxu0 }
 0x1c5   :  { %v3935_v23 = vpop.f32.mrb[15].mxu1  ;;  %v3937_v27 = vpop.f32.mrb[15].mxu0  ;;  %2934 = vmatpush3.bf16.msra.mxu1 %v3247_v21  ;;  %2998 = vmatpush3.bf16.msra.mxu0 %v3249_v24 }
 0x1c6   :  { %3047 = vmatprep.subr.bf16.mxu1 %v3250_v30  ;;  %3111 = vmatprep.subr.bf16.mxu0 %v3252_v31 }
 0x1c7   :  { %2833 = vmatmul.mubr.msk.bf16.gmra.mrb[120].mxu1 %vm109_vm0, %v3743_v41  ;;  %2841 = vmatmul.mubr.msk.bf16.gmra.mrb[120].mxu0 %vm109_vm0, %v3743_v41 }
 0x1c8   :  { %1450 = vmatprep.mubr.bf16.mxu1 %v3282_v44  ;;  %1563 = vmatprep.mubr.bf16.mxu0 %v3282_v44 }
 0x1ca   :  { %v3948_v32 = vpop.f32.mrb[16].mxu1  ;;  %v3950_v33 = vpop.f32.mrb[16].mxu0 }
 0x1cb   :  { %v3952_v34 = vpop.f32.mrb[17].mxu1  ;;  %v3954_v35 = vpop.f32.mrb[17].mxu0 }
 0x1cc   :  { %v3956_v36 = vpop.f32.mrb[18].mxu1  ;;  %v3958_v37 = vpop.f32.mrb[18].mxu0 }
 0x1cd   :  { %v3960_v38 = vpop.f32.mrb[19].mxu1  ;;  %v3962_v39 = vpop.f32.mrb[19].mxu0 }
 0x1cf   :  { %2834 = vmatmul.mubr.msk.bf16.gmra.mrb[124].mxu1 %vm109_vm0, %v3760_v48  ;;  %2842 = vmatmul.mubr.msk.bf16.gmra.mrb[124].mxu0 %vm109_vm0, %v3760_v48 }
 0x1d0   :  { %1460 = vmatprep.mubr.bf16.mxu1 %v3282_v44  ;;  %1573 = vmatprep.mubr.bf16.mxu0 %v3282_v44 }
 0x1d2   :  { %v3970_v40 = vpop.f32.mrb[20].mxu1  ;;  %v3972_v41 = vpop.f32.mrb[20].mxu0 }
 0x1d3   :  { %v3974_v46 = vpop.f32.mrb[21].mxu1  ;;  %v3976_v47 = vpop.f32.mrb[21].mxu0 }
 0x1d4   :  { %v3978_v53 = vpop.f32.mrb[22].mxu1  ;;  %v3980_v54 = vpop.f32.mrb[22].mxu0 }
 0x1d5   :  { %v3982_v42 = vpop.f32.mrb[23].mxu1  ;;  %v3984_v43 = vpop.f32.mrb[23].mxu0 }
 0x1d7   :  { %2835 = vmatmul.mubr.msk.bf16.gmra.mrb[128].mxu1 %vm109_vm0, %v3771_v50  ;;  %2843 = vmatmul.mubr.msk.bf16.gmra.mrb[128].mxu0 %vm109_vm0, %v3771_v50 }
 0x1d8   :  { %1470 = vmatprep.mubr.bf16.mxu1 %v3282_v44  ;;  %1583 = vmatprep.mubr.bf16.mxu0 %v3282_v44 }
 0x1da   :  { %v3992_v48 = vpop.f32.mrb[24].mxu1  ;;  %v3994_v45 = vpop.f32.mrb[24].mxu0 }
 0x1db   :  { %v3996_v49 = vpop.f32.mrb[25].mxu1  ;;  %v3998_v55 = vpop.f32.mrb[25].mxu0 }
 0x1dc   :  { %v4000_v56 = vpop.f32.mrb[26].mxu1  ;;  %v4002_v57 = vpop.f32.mrb[26].mxu0 }
 0x1dd   :  { %v4004_v58 = vpop.f32.mrb[27].mxu1  ;;  %v4006_v51 = vpop.f32.mrb[27].mxu0 }
 0x1df   :  { %2836 = vmatmul.mubr.msk.bf16.gmra.mrb[132].mxu1 %vm109_vm0, %v3782_v52  ;;  %2844 = vmatmul.mubr.msk.bf16.gmra.mrb[132].mxu0 %vm109_vm0, %v3782_v52 }
 0x1e2   :  { %v4012_v44 = vpop.f32.mrb[28].mxu1  ;;  %v4014_v50 = vpop.f32.mrb[28].mxu0 }
 0x1e3   :  { %v4016_v59 = vpop.f32.mrb[29].mxu1  ;;  %v4018_v60 = vpop.f32.mrb[29].mxu0 }
 0x1e4   :  { %4698 = vst [vmem:[#allocation2_spill] sm:$0xff] %v4016_v59  ;;  %4699 = vst [vmem:[#allocation3_spill] sm:$0xff] %v4018_v60  ;;  %v4020_v61 = vpop.f32.mrb[30].mxu1  ;;  %v4022_v62 = vpop.f32.mrb[30].mxu0 }
 0x1e5   :  { %4700 = vst [vmem:[#allocation4_spill] sm:$0xff] %v4020_v61  ;;  %4701 = vst [vmem:[#allocation5_spill] sm:$0xff] %v4022_v62  ;;  %v4024_v63 = vpop.f32.mrb[31].mxu1  ;;  %v4026_v0 = vpop.f32.mrb[31].mxu0 }
 0x1e6   :  { %4702 = vst [vmem:[#allocation6_spill] sm:$0xff] %v4024_v63  ;;  %4703 = vst [vmem:[#allocation7_spill] sm:$0xff] %v4026_v0 }
 0x1ea   :  { %v4028_v1 = vpop.f32.mrb[32].mxu1  ;;  %v4030_v2 = vpop.f32.mrb[32].mxu0 }
 0x1eb   :  { %4704 = vst [vmem:[#allocation8_spill] sm:$0xff] %v4028_v1  ;;  %4705 = vst [vmem:[#allocation9_spill] sm:$0xff] %v4030_v2  ;;  %v4032_v52 = vpop.f32.mrb[33].mxu1  ;;  %v4034_v3 = vpop.f32.mrb[33].mxu0 }
 0x1ec   :  { %4706 = vst [vmem:[#allocation10_spill] sm:$0xff] %v4032_v52  ;;  %4707 = vst [vmem:[#allocation11_spill] sm:$0xff] %v4034_v3  ;;  %v4036_v4 = vpop.f32.mrb[34].mxu1  ;;  %v4038_v5 = vpop.f32.mrb[34].mxu0 }
 0x1ed   :  { %4708 = vst [vmem:[#allocation12_spill] sm:$0xff] %v4036_v4  ;;  %4709 = vst [vmem:[#allocation13_spill] sm:$0xff] %v4038_v5  ;;  %v4040_v8 = vpop.f32.mrb[35].mxu1  ;;  %v4042_v9 = vpop.f32.mrb[35].mxu0 }
 0x1ee   :  { %4710 = vst [vmem:[#allocation14_spill] sm:$0xff] %v4040_v8  ;;  %4711 = vst [vmem:[#allocation15_spill] sm:$0xff] %v4042_v9 }
 0x1f2   :  { %v4044_v16 = vpop.f32.mrb[36].mxu1  ;;  %v4046_v17 = vpop.f32.mrb[36].mxu0 }
 0x1f3   :  { %4712 = vst [vmem:[#allocation16_spill] sm:$0xff] %v4044_v16  ;;  %4713 = vst [vmem:[#allocation17_spill] sm:$0xff] %v4046_v17  ;;  %v4048_v18 = vpop.f32.mrb[37].mxu1  ;;  %v4050_v19 = vpop.f32.mrb[37].mxu0 }
 0x1f4   :  { %4714 = vst [vmem:[#allocation18_spill] sm:$0xff] %v4048_v18  ;;  %4715 = vst [vmem:[#allocation19_spill] sm:$0xff] %v4050_v19  ;;  %v4052_v21 = vpop.f32.mrb[38].mxu1  ;;  %v4054_v24 = vpop.f32.mrb[38].mxu0 }
 0x1f5   :  { %4716 = vst [vmem:[#allocation20_spill] sm:$0xff] %v4052_v21  ;;  %4717 = vst [vmem:[#allocation21_spill] sm:$0xff] %v4054_v24  ;;  %v4056_v30 = vpop.f32.mrb[39].mxu1  ;;  %v4058_v31 = vpop.f32.mrb[39].mxu0 }
 0x1f6   :  { %4718 = vst [vmem:[#allocation22_spill] sm:$0xff] %v4056_v30  ;;  %4719 = vst [vmem:[#allocation23_spill] sm:$0xff] %v4058_v31 }
 0x1fa   :  { %v4060_v5 = vpop.f32.mrb[40].mxu1  ;;  %v4062_v8 = vpop.f32.mrb[40].mxu0 }
 0x1fb   :  { %4720 = vst [vmem:[#allocation24_spill] sm:$0xff] %v4060_v5  ;;  %4721 = vst [vmem:[#allocation25_spill] sm:$0xff] %v4062_v8  ;;  %v4064_v9 = vpop.f32.mrb[41].mxu1  ;;  %v4066_v16 = vpop.f32.mrb[41].mxu0 }
 0x1fc   :  { %4722 = vst [vmem:[#allocation26_spill] sm:$0xff] %v4064_v9  ;;  %4723 = vst [vmem:[#allocation27_spill] sm:$0xff] %v4066_v16  ;;  %v4068_v17 = vpop.f32.mrb[42].mxu1  ;;  %v4070_v18 = vpop.f32.mrb[42].mxu0 }
 0x1fd   :  { %4724 = vst [vmem:[#allocation28_spill] sm:$0xff] %v4068_v17  ;;  %4725 = vst [vmem:[#allocation29_spill] sm:$0xff] %v4070_v18  ;;  %v4072_v19 = vpop.f32.mrb[43].mxu1  ;;  %v4074_v21 = vpop.f32.mrb[43].mxu0 }
 0x1fe   :  { %4726 = vst [vmem:[#allocation30_spill] sm:$0xff] %v4072_v19  ;;  %4727 = vst [vmem:[#allocation31_spill] sm:$0xff] %v4074_v21 }
 0x202   :  { %v4076_v24 = vpop.f32.mrb[44].mxu1  ;;  %v4078_v30 = vpop.f32.mrb[44].mxu0 }
 0x203   :  { %4728 = vst [vmem:[#allocation32_spill] sm:$0xff] %v4076_v24  ;;  %4729 = vst [vmem:[#allocation33_spill] sm:$0xff] %v4078_v30  ;;  %v4080_v31 = vpop.f32.mrb[45].mxu1  ;;  %v4082_v5 = vpop.f32.mrb[45].mxu0 }
 0x204   :  { %4730 = vst [vmem:[#allocation34_spill] sm:$0xff] %v4080_v31  ;;  %4731 = vst [vmem:[#allocation35_spill] sm:$0xff] %v4082_v5  ;;  %v4084_v8 = vpop.f32.mrb[46].mxu1  ;;  %v4086_v9 = vpop.f32.mrb[46].mxu0 }
 0x205   :  { %4732 = vst [vmem:[#allocation36_spill] sm:$0xff] %v4084_v8  ;;  %4733 = vst [vmem:[#allocation37_spill] sm:$0xff] %v4086_v9  ;;  %v4088_v16 = vpop.f32.mrb[47].mxu1  ;;  %v4090_v17 = vpop.f32.mrb[47].mxu0 }
 0x206   :  { %4734 = vst [vmem:[#allocation38_spill] sm:$0xff] %v4088_v16  ;;  %4735 = vst [vmem:[#allocation39_spill] sm:$0xff] %v4090_v17 }
 0x20a   :  { %v4092_v18 = vpop.f32.mrb[48].mxu1  ;;  %v4094_v19 = vpop.f32.mrb[48].mxu0 }
 0x20b   :  { %4736 = vst [vmem:[#allocation40_spill] sm:$0xff] %v4092_v18  ;;  %4737 = vst [vmem:[#allocation41_spill] sm:$0xff] %v4094_v19  ;;  %v4096_v21 = vpop.f32.mrb[49].mxu1  ;;  %v4098_v24 = vpop.f32.mrb[49].mxu0 }
 0x20c   :  { %4738 = vst [vmem:[#allocation42_spill] sm:$0xff] %v4096_v21  ;;  %4739 = vst [vmem:[#allocation43_spill] sm:$0xff] %v4098_v24  ;;  %v4100_v30 = vpop.f32.mrb[50].mxu1  ;;  %v4102_v31 = vpop.f32.mrb[50].mxu0 }
 0x20d   :  { %4740 = vst [vmem:[#allocation44_spill] sm:$0xff] %v4100_v30  ;;  %4741 = vst [vmem:[#allocation45_spill] sm:$0xff] %v4102_v31  ;;  %v4104_v5 = vpop.f32.mrb[51].mxu1  ;;  %v4106_v8 = vpop.f32.mrb[51].mxu0 }
 0x20e   :  { %4742 = vst [vmem:[#allocation46_spill] sm:$0xff] %v4104_v5  ;;  %4743 = vst [vmem:[#allocation47_spill] sm:$0xff] %v4106_v8 }
 0x212   :  { %v4108_v9 = vpop.f32.mrb[52].mxu1  ;;  %v4110_v16 = vpop.f32.mrb[52].mxu0 }
 0x213   :  { %4744 = vst [vmem:[#allocation48_spill] sm:$0xff] %v4108_v9  ;;  %4745 = vst [vmem:[#allocation49_spill] sm:$0xff] %v4110_v16  ;;  %v4112_v17 = vpop.f32.mrb[53].mxu1  ;;  %v4114_v18 = vpop.f32.mrb[53].mxu0 }
 0x214   :  { %4746 = vst [vmem:[#allocation50_spill] sm:$0xff] %v4112_v17  ;;  %4747 = vst [vmem:[#allocation51_spill] sm:$0xff] %v4114_v18  ;;  %v4116_v19 = vpop.f32.mrb[54].mxu1  ;;  %v4118_v21 = vpop.f32.mrb[54].mxu0 }
 0x215   :  { %4748 = vst [vmem:[#allocation52_spill] sm:$0xff] %v4116_v19  ;;  %4749 = vst [vmem:[#allocation53_spill] sm:$0xff] %v4118_v21  ;;  %v4120_v24 = vpop.f32.mrb[55].mxu1  ;;  %v4122_v30 = vpop.f32.mrb[55].mxu0 }
 0x216   :  { %4750 = vst [vmem:[#allocation54_spill] sm:$0xff] %v4120_v24  ;;  %4751 = vst [vmem:[#allocation55_spill] sm:$0xff] %v4122_v30 }
 0x21a   :  { %v4124_v31 = vpop.f32.mrb[56].mxu1  ;;  %v4126_v5 = vpop.f32.mrb[56].mxu0 }
 0x21b   :  { %4752 = vst [vmem:[#allocation56_spill] sm:$0xff] %v4124_v31  ;;  %4753 = vst [vmem:[#allocation57_spill] sm:$0xff] %v4126_v5  ;;  %v4128_v8 = vpop.f32.mrb[57].mxu1  ;;  %v4130_v9 = vpop.f32.mrb[57].mxu0 }
 0x21c   :  { %4754 = vst [vmem:[#allocation58_spill] sm:$0xff] %v4128_v8  ;;  %4755 = vst [vmem:[#allocation59_spill] sm:$0xff] %v4130_v9  ;;  %v4132_v16 = vpop.f32.mrb[58].mxu1  ;;  %v4134_v17 = vpop.f32.mrb[58].mxu0 }
 0x21d   :  { %4756 = vst [vmem:[#allocation60_spill] sm:$0xff] %v4132_v16  ;;  %4757 = vst [vmem:[#allocation61_spill] sm:$0xff] %v4134_v17  ;;  %v4136_v18 = vpop.f32.mrb[59].mxu1  ;;  %v4138_v19 = vpop.f32.mrb[59].mxu0  ;;  %v289_v17 = vlaneseq }
 0x21e   :  { %4758 = vst [vmem:[#allocation62_spill] sm:$0xff] %v4136_v18  ;;  %4759 = vst [vmem:[#allocation63_spill] sm:$0xff] %v4138_v19 }
 0x222   :  { %v4140_v21 = vpop.f32.mrb[60].mxu1  ;;  %v4142_v24 = vpop.f32.mrb[60].mxu0 }
 0x223   :  { %4760 = vst [vmem:[#allocation64_spill] sm:$0xff] %v4140_v21  ;;  %4761 = vst [vmem:[#allocation65_spill] sm:$0xff] %v4142_v24  ;;  %v4144_v30 = vpop.f32.mrb[61].mxu1  ;;  %v4146_v31 = vpop.f32.mrb[61].mxu0 }
 0x224   :  { %4762 = vst [vmem:[#allocation66_spill] sm:$0xff] %v4144_v30  ;;  %4763 = vst [vmem:[#allocation67_spill] sm:$0xff] %v4146_v31  ;;  %v4148_v5 = vpop.f32.mrb[62].mxu1  ;;  %v4150_v8 = vpop.f32.mrb[62].mxu0 }
 0x225   :  { %4764 = vst [vmem:[#allocation68_spill] sm:$0xff] %v4148_v5  ;;  %4765 = vst [vmem:[#allocation69_spill] sm:$0xff] %v4150_v8  ;;  %v4152_v9 = vpop.f32.mrb[63].mxu1  ;;  %v4154_v16 = vpop.f32.mrb[63].mxu0  ;;  %v4168_v5 = vshrl.u32 %v289_v17, 7 }
 0x226   :  { %4766 = vst [vmem:[#allocation70_spill] sm:$0xff] %v4152_v9  ;;  %4767 = vst [vmem:[#allocation71_spill] sm:$0xff] %v4154_v16 }
 0x227   :  { %4774 = vst [vmem:[#allocation78_spill] sm:$0xff] %v4168_v5  ;;  %v291_v16 = vsub.s32 0, %v4168_v5 }
 0x22a   :  { %v4156_v18 = vpop.f32.mrb[64].mxu1  ;;  %v4158_v19 = vpop.f32.mrb[64].mxu0 }
 0x22b   :  { %4768 = vst [vmem:[#allocation72_spill] sm:$0xff] %v4156_v18  ;;  %4769 = vst [vmem:[#allocation73_spill] sm:$0xff] %v4158_v19  ;;  %v4160_v21 = vpop.f32.mrb[65].mxu1  ;;  %v4162_v24 = vpop.f32.mrb[65].mxu0  ;;  %v299_v18 = vsub.s32 2, %v4168_v5 }
 0x22c   :  { %4770 = vst [vmem:[#allocation74_spill] sm:$0xff] %v4160_v21  ;;  %4771 = vst [vmem:[#allocation75_spill] sm:$0xff] %v4162_v24  ;;  %v4164_v30 = vpop.f32.mrb[66].mxu1  ;;  %v4166_v31 = vpop.f32.mrb[66].mxu0  ;;  %v4179_v21 = vld [vmem:[%s4692_s5] sm:$0xff]  ;;  %v295_v24 = vsub.s32 1, %v4168_v5 }
 0x22d   :  { %4772 = vst [vmem:[#allocation76_spill] sm:$0xff] %v4164_v30  ;;  %4773 = vst [vmem:[#allocation77_spill] sm:$0xff] %v4166_v31  ;;  %v4170_v8 = vpop.f32.mrb[67].mxu1  ;;  %v4172_v9 = vpop.f32.mrb[67].mxu0  ;;  %v303_v30 = vsub.s32 3, %v4168_v5  ;;  %v4196_v3 = vrot.slane %v4179_v21, %v291_v16  ;;  %v4199_v52 = vrot.slane %v4179_v21, %v299_v18 }
 0x22e   :  { %4775 = vst [vmem:[#allocation79_spill] sm:$0xff] %v4170_v8  ;;  %4776 = vst [vmem:[#allocation80_spill] sm:$0xff] %v4172_v9 }
 0x22f   :  { %4777 = vst [vmem:[#allocation81_spill] sm:$0xff] %v4179_v21  ;;  %v662_v16 = vadd.f32 %v3876_v7, %v4199_v52 }
 0x232   :  { %v4183_v31 = vpop.f32.mrb[68].mxu1  ;;  %v4185_v17 = vpop.f32.mrb[68].mxu0 }
 0x233   :  { %4778 = vst [vmem:[#allocation82_spill] sm:$0xff] %v4183_v31  ;;  %4779 = vst [vmem:[#allocation83_spill] sm:$0xff] %v4185_v17  ;;  %v4187_v8 = vpop.f32.mrb[69].mxu1  ;;  %v4189_v9 = vpop.f32.mrb[69].mxu0  ;;  %v4206_v17 = vrot.slane %v4179_v21, %v295_v24  ;;  %v553_v24 = vadd.f32 %v3888_v12, %v4196_v3 }
 0x234   :  { %4780 = vst [vmem:[#allocation84_spill] sm:$0xff] %v4187_v8  ;;  %4781 = vst [vmem:[#allocation85_spill] sm:$0xff] %v4189_v9  ;;  %v4191_v19 = vpop.f32.mrb[70].mxu1  ;;  %v4193_v4 = vpop.f32.mrb[70].mxu0  ;;  %v4209_v8 = vrot.slane %v4179_v21, %v303_v30  ;;  %v666_v30 = vadd.f32 %v3890_v13, %v4199_v52 }
 0x235   :  { %4782 = vst [vmem:[#allocation86_spill] sm:$0xff] %v4191_v19  ;;  %4783 = vst [vmem:[#allocation87_spill] sm:$0xff] %v4193_v4  ;;  %v4201_v2 = vpop.f32.mrb[71].mxu1  ;;  %v4203_v5 = vpop.f32.mrb[71].mxu0  ;;  %v549_v19 = vadd.f32 %v3874_v6, %v4196_v3  ;;  %v551_v18 = vadd.f32 %v3884_v10, %v4206_v17  ;;  %v555_v7 = vadd.f32 %v3892_v14, %v4206_v17  ;;  %v3251_v14 = vld [vmem:[%s4691_s7 + $0x100] sm:$0xff]  }
 0x236   :  { %4784 = vst [vmem:[#allocation88_spill] sm:$0xff] %v4201_v2  ;;  %4785 = vst [vmem:[#allocation89_spill] sm:$0xff] %v4203_v5  ;;  %v664_v2 = vadd.f32 %v3886_v11, %v4209_v8  ;;  %v668_v10 = vadd.f32 %v3894_v15, %v4209_v8  ;;  %v3253_v15 = vld [vmem:[%s4691_s7 + $0x180] sm:$0xff]  }
 0x23a   :  { %v1176_v4 = vpop.f32.mrb[72].mxu1  ;;  %v1289_v5 = vpop.f32.mrb[72].mxu0 }
 0x23b   :  { %v1594_v9 = vmul.f32 %v1176_v4, %v549_v19  ;;  %v1596_v31 = vmul.f32 %v1289_v5, %v662_v16  ;;  %v1178_v6 = vpop.f32.mrb[73].mxu1  ;;  %v1291_v21 = vpop.f32.mrb[73].mxu0 }
 0x23c   :  { %v1595_v1 = vmul.f32 %v1178_v6, %v551_v18  ;;  %v1597_v11 = vmul.f32 %v1291_v21, %v664_v2  ;;  %v1180_v0 = vpop.f32.mrb[74].mxu1  ;;  %v1293_v63 = vpop.f32.mrb[74].mxu0  ;;  %v3255_v6 = vld [vmem:[%s4691_s7 + $0x108] sm:$0xff]  }
 0x23d   :  { %v1602_v62 = vmul.f32 %v1180_v0, %v553_v24  ;;  %v1604_v61 = vmul.f32 %v1293_v63, %v666_v30  ;;  %v1182_v12 = vpop.f32.mrb[75].mxu1  ;;  %v1295_v60 = vpop.f32.mrb[75].mxu0  ;;  %v559_v0 = vadd.f32 %v3920_v25, %v4196_v3  ;;  %v672_v63 = vadd.f32 %v3922_v26, %v4199_v52 }
 0x23e   :  { %v1603_v59 = vmul.f32 %v1182_v12, %v555_v7  ;;  %v1605_v13 = vmul.f32 %v1295_v60, %v668_v10  ;;  %v561_v60 = vadd.f32 %v3924_v28, %v4206_v17  ;;  %v563_v25 = vadd.f32 %v3931_v20, %v4196_v3 }
 0x23f   :  { %v1722_v4 = vpack.c.bf16 %v1602_v62, %v1594_v9  ;;  %v1724_v5 = vpack.c.bf16 %v1604_v61, %v1596_v31  ;;  %v3256_v61 = vld [vmem:[%s4691_s7 + $0x1c8] sm:$0xff]   ;;  %v674_v62 = vadd.f32 %v3926_v29, %v4209_v8  ;;  %v676_v26 = vadd.f32 %v3933_v22, %v4199_v52 }
 0x240   :  { %v1723_v19 = vpack.c.bf16 %v1603_v59, %v1595_v1  ;;  %v1725_v16 = vpack.c.bf16 %v1605_v13, %v1597_v11  ;;  %v3254_v59 = vld [vmem:[%s4691_s7 + $0x148] sm:$0xff]   ;;  %v565_v28 = vadd.f32 %v3935_v23, %v4206_v17  ;;  %v678_v29 = vadd.f32 %v3937_v27, %v4209_v8  ;;  %v3258_v27 = vld [vmem:[%s4691_s7 + $0x150] sm:$0xff]  }
 0x241   :  { %v3257_v23 = vld [vmem:[%s4691_s7 + $0x188] sm:$0xff]   ;;  %v3260_v13 = vld [vmem:[%s4691_s7 + $0x1d0] sm:$0xff]  }
 0x242   :  { %v1186_v1 = vpop.f32.mrb[76].mxu1  ;;  %v1299_v2 = vpop.f32.mrb[76].mxu0  ;;  %2330 = vmatprep.mubr.bf16.mxu1 %v1723_v19  ;;  %2427 = vmatprep.mubr.bf16.mxu0 %v1725_v16 }
 0x243   :  { %v1610_v9 = vmul.f32 %v1186_v1, %v559_v0  ;;  %v1612_v21 = vmul.f32 %v1299_v2, %v672_v63  ;;  %v1188_v31 = vpop.f32.mrb[77].mxu1  ;;  %v1301_v18 = vpop.f32.mrb[77].mxu0  ;;  %2331 = vmatmul.mubr.bf16.vlgmr.msra.gmra.mrb[136].mxu1 %v1722_v4  ;;  %2428 = vmatmul.mubr.bf16.vlgmr.msra.gmra.mrb[136].mxu0 %v1724_v5  ;;  %v3259_v0 = vld [vmem:[%s4691_s7 + $0x110] sm:$0xff]   ;;  %v575_v2 = vadd.f32 %v3960_v38, %v4206_v17  ;;  %v3265_v38 = vld [vmem:[%s4691_s7 + $0x198] sm:$0xff]  }
 0x244   :  { %v1611_v20 = vmul.f32 %v1188_v31, %v561_v60  ;;  %v1613_v24 = vmul.f32 %v1301_v18, %v674_v62  ;;  %3048 = vmatpush3.bf16.msra.mxu1 %v3251_v14  ;;  %v1190_v22 = vpop.f32.mrb[78].mxu1  ;;  %v1303_v30 = vpop.f32.mrb[78].mxu0  ;;  %3112 = vmatpush3.bf16.msra.mxu0 %v3253_v15  ;;  %v3261_v63 = vld [vmem:[%s4691_s7 + $0x190] sm:$0xff]   ;;  %v569_v60 = vadd.f32 %v3948_v32, %v4196_v3  ;;  %v3262_v62 = vld [vmem:[%s4691_s7 + $0x158] sm:$0xff]  }
 0x245   :  { %v1618_v7 = vmul.f32 %v1190_v22, %v563_v25  ;;  %v1620_v10 = vmul.f32 %v1303_v30, %v676_v26  ;;  %v1192_v11 = vpop.f32.mrb[79].mxu1  ;;  %v1305_v12 = vpop.f32.mrb[79].mxu0  ;;  %3049 = vmatprep.subr.bf16.mxu1 %v3254_v59  ;;  %3113 = vmatprep.subr.bf16.mxu0 %v3256_v61  ;;  %v682_v59 = vadd.f32 %v3950_v33, %v4199_v52  ;;  %v3264_v25 = vld [vmem:[%s4691_s7 + $0x1d8] sm:$0xff]  }
 0x246   :  { %v1619_v4 = vmul.f32 %v1192_v11, %v565_v28  ;;  %v1621_v5 = vmul.f32 %v1305_v12, %v678_v29  ;;  %v571_v61 = vadd.f32 %v3952_v34, %v4206_v17  ;;  %v684_v26 = vadd.f32 %v3954_v35, %v4209_v8 }
 0x247   :  { %v1730_v19 = vpack.c.bf16 %v1618_v7, %v1610_v9  ;;  %v1732_v16 = vpack.c.bf16 %v1620_v10, %v1612_v21  ;;  %v573_v32 = vadd.f32 %v3956_v36, %v4196_v3  ;;  %v686_v33 = vadd.f32 %v3958_v37, %v4199_v52 }
 0x248   :  { %v1731_v14 = vpack.c.bf16 %v1619_v4, %v1611_v20  ;;  %v1733_v15 = vpack.c.bf16 %v1621_v5, %v1613_v24  ;;  %3050 = vmatpush3.bf16.msra.mxu1 %v3255_v6  ;;  %3114 = vmatpush3.bf16.msra.mxu0 %v3257_v23  ;;  %v688_v35 = vadd.f32 %v3962_v39, %v4209_v8  ;;  %v3263_v20 = vld [vmem:[%s4691_s7 + $0x118] sm:$0xff]   ;;  %v3266_v39 = vld [vmem:[%s4691_s7 + $0x160] sm:$0xff]  }
 0x249   :  { %3051 = vmatprep.subr.bf16.mxu1 %v3258_v27  ;;  %3115 = vmatprep.subr.bf16.mxu0 %v3260_v13  ;;  %v3268_v23 = vld [vmem:[%s4691_s7 + $0x1e0] sm:$0xff]  }
 0x24a   :  { %v1196_v34 = vpop.f32.mrb[80].mxu1  ;;  %v1309_v1 = vpop.f32.mrb[80].mxu0  ;;  %2338 = vmatprep.mubr.bf16.mxu1 %v1731_v14  ;;  %2435 = vmatprep.mubr.bf16.mxu0 %v1733_v15  ;;  %v3267_v4 = vld [vmem:[%s4691_s7 + $0x120] sm:$0xff]   ;;  %v581_v14 = vadd.f32 %v3974_v46, %v4206_v17  ;;  %v3270_v15 = vld [vmem:[%s4691_s7 + $0x168] sm:$0xff]  }
 0x24b   :  { %v1626_v28 = vmul.f32 %v1196_v34, %v569_v60  ;;  %v1628_v9 = vmul.f32 %v1309_v1, %v682_v59  ;;  %v1198_v21 = vpop.f32.mrb[81].mxu1  ;;  %v1311_v31 = vpop.f32.mrb[81].mxu0  ;;  %2339 = vmatmul.mubr.bf16.gmra.mrb[140].mxu1 %v1730_v19  ;;  %2436 = vmatmul.mubr.bf16.gmra.mrb[140].mxu0 %v1732_v16  ;;  %v3269_v5 = vld [vmem:[%s4691_s7 + $0x1a0] sm:$0xff]   ;;  %v579_v19 = vadd.f32 %v3970_v40, %v4196_v3  ;;  %v3271_v34 = vld [vmem:[%s4691_s7 + $0x128] sm:$0xff]  }
 0x24c   :  { %v1627_v36 = vmul.f32 %v1198_v21, %v571_v61  ;;  %v1629_v18 = vmul.f32 %v1311_v31, %v684_v26  ;;  %v1200_v29 = vpop.f32.mrb[82].mxu1  ;;  %v1313_v37 = vpop.f32.mrb[82].mxu0  ;;  %3052 = vmatpush3.bf16.msra.mxu1 %v3259_v0  ;;  %3116 = vmatpush3.bf16.msra.mxu0 %v3261_v63  ;;  %v692_v16 = vadd.f32 %v3972_v41, %v4199_v52  ;;  %v3272_v0 = vld [vmem:[%s4691_s7 + $0x1e8] sm:$0xff]   ;;  %v3276_v21 = vld [vmem:[%s4691_s7 + $0x1f0] sm:$0xff]  }
 0x24d   :  { %v1634_v24 = vmul.f32 %v1200_v29, %v573_v32  ;;  %v1636_v22 = vmul.f32 %v1313_v37, %v686_v33  ;;  %v1202_v30 = vpop.f32.mrb[83].mxu1  ;;  %v1315_v6 = vpop.f32.mrb[83].mxu0  ;;  %3053 = vmatprep.subr.bf16.mxu1 %v3262_v62  ;;  %3117 = vmatprep.subr.bf16.mxu0 %v3264_v25  ;;  %v694_v63 = vadd.f32 %v3976_v47, %v4209_v8 }
 0x24e   :  { %v1635_v7 = vmul.f32 %v1202_v30, %v575_v2  ;;  %v1637_v10 = vmul.f32 %v1315_v6, %v688_v35  ;;  %v583_v40 = vadd.f32 %v3978_v53, %v4196_v3  ;;  %v696_v41 = vadd.f32 %v3980_v54, %v4199_v52  ;;  %v3278_v6 = vld [vmem:[%s4691_s7 + $0x178] sm:$0xff]  }
 0x24f   :  { %v1738_v11 = vpack.c.bf16 %v1634_v24, %v1626_v28  ;;  %v1740_v12 = vpack.c.bf16 %v1636_v22, %v1628_v9  ;;  %v585_v59 = vadd.f32 %v3982_v42, %v4206_v17  ;;  %v698_v47 = vadd.f32 %v3984_v43, %v4209_v8  ;;  %v3273_v42 = vld [vmem:[%s4691_s7 + $0x1a8] sm:$0xff]   ;;  %v3274_v43 = vld [vmem:[%s4691_s7 + $0x170] sm:$0xff]  }
 0x250   :  { %v1739_v27 = vpack.c.bf16 %v1635_v7, %v1627_v36  ;;  %v1741_v13 = vpack.c.bf16 %v1637_v10, %v1629_v18  ;;  %3054 = vmatpush3.bf16.msra.mxu1 %v3263_v20  ;;  %3118 = vmatpush3.bf16.msra.mxu0 %v3265_v38  ;;  %v3275_v20 = vld [vmem:[%s4691_s7 + $0x130] sm:$0xff]   ;;  %v589_v24 = vadd.f32 %v3992_v48, %v4196_v3 }
 0x251   :  { %3055 = vmatprep.subr.bf16.mxu1 %v3266_v39  ;;  %3119 = vmatprep.subr.bf16.mxu0 %v3268_v23  ;;  %v3277_v38 = vld [vmem:[%s4691_s7 + $0x1b0] sm:$0xff]   ;;  %v702_v22 = vadd.f32 %v3994_v45, %v4199_v52  ;;  %v591_v30 = vadd.f32 %v3996_v49, %v4206_v17  ;;  %v3280_v39 = vld [vmem:[%s4691_s7 + $0x1f8] sm:$0xff]   ;;  %v704_v23 = vadd.f32 %v3998_v55, %v4209_v8 }
 0x252   :  { %v1206_v46 = vpop.f32.mrb[84].mxu1  ;;  %v1319_v60 = vpop.f32.mrb[84].mxu0  ;;  %2346 = vmatprep.mubr.bf16.mxu1 %v1739_v27  ;;  %2443 = vmatprep.mubr.bf16.mxu0 %v1741_v13  ;;  %v593_v48 = vadd.f32 %v4000_v56, %v4196_v3  ;;  %v706_v45 = vadd.f32 %v4002_v57, %v4199_v52  ;;  %v595_v10 = vadd.f32 %v4004_v58, %v4206_v17  ;;  %v3281_v58 = vld [vmem:[%s4691_s7 + $0x1b8] sm:$0xff]  }
 0x253   :  { %v1642_v61 = vmul.f32 %v1206_v46, %v579_v19  ;;  %v1644_v62 = vmul.f32 %v1319_v60, %v692_v16  ;;  %v1208_v25 = vpop.f32.mrb[85].mxu1  ;;  %v1321_v26 = vpop.f32.mrb[85].mxu0  ;;  %2347 = vmatmul.mubr.bf16.gmra.mrb[144].mxu1 %v1738_v11  ;;  %2444 = vmatmul.mubr.bf16.gmra.mrb[144].mxu0 %v1740_v12  ;;  %v708_v55 = vadd.f32 %v4006_v51, %v4209_v8  ;;  %v3279_v19 = vld [vmem:[%s4691_s7 + $0x138] sm:$0xff]  }
 0x254   :  { %v1643_v53 = vmul.f32 %v1208_v25, %v581_v14  ;;  %v1645_v32 = vmul.f32 %v1321_v26, %v694_v63  ;;  %v1210_v33 = vpop.f32.mrb[86].mxu1  ;;  %v1323_v54 = vpop.f32.mrb[86].mxu0  ;;  %3056 = vmatpush3.bf16.msra.mxu1 %v3267_v4  ;;  %3120 = vmatpush3.bf16.msra.mxu0 %v3269_v5  ;;  %v4787_v26 = vld [vmem:[#allocation3_spill] sm:$0xff] }
 0x255   :  { %v1650_v1 = vmul.f32 %v1210_v33, %v583_v40  ;;  %v1652_v2 = vmul.f32 %v1323_v54, %v696_v41  ;;  %v1212_v28 = vpop.f32.mrb[87].mxu1  ;;  %v1325_v9 = vpop.f32.mrb[87].mxu0  ;;  %3057 = vmatprep.subr.bf16.mxu1 %v3270_v15  ;;  %3121 = vmatprep.subr.bf16.mxu0 %v3272_v0 }
 0x256   :  { %v1651_v31 = vmul.f32 %v1212_v28, %v585_v59  ;;  %v1653_v35 = vmul.f32 %v1325_v9, %v698_v47  ;;  %v599_v59 = vadd.f32 %v4012_v44, %v4196_v3  ;;  %v714_v47 = vadd.f32 %v4787_v26, %v4209_v8  ;;  %v4790_v28 = vld [vmem:[#allocation6_spill] sm:$0xff] }
 0x257   :  { %v1746_v36 = vpack.c.bf16 %v1650_v1, %v1642_v61  ;;  %v1748_v18 = vpack.c.bf16 %v1652_v2, %v1644_v62  ;;  %v712_v61 = vadd.f32 %v4014_v50, %v4199_v52  ;;  %v4786_v62 = vld [vmem:[#allocation2_spill] sm:$0xff]  ;;  %v605_v9 = vadd.f32 %v4790_v28, %v4206_v17 }
 0x258   :  { %v1747_v29 = vpack.c.bf16 %v1651_v31, %v1643_v53  ;;  %v1749_v37 = vpack.c.bf16 %v1653_v35, %v1645_v32  ;;  %3058 = vmatpush3.bf16.msra.mxu1 %v3271_v34  ;;  %3122 = vmatpush3.bf16.msra.mxu0 %v3273_v42  ;;  %v601_v25 = vadd.f32 %v4786_v62, %v4206_v17  ;;  %v4788_v53 = vld [vmem:[#allocation4_spill] sm:$0xff]  ;;  %v4789_v34 = vld [vmem:[#allocation5_spill] sm:$0xff] }
 0x259   :  { %3059 = vmatprep.subr.bf16.mxu1 %v3274_v43  ;;  %3123 = vmatprep.subr.bf16.mxu0 %v3276_v21  ;;  %v603_v32 = vadd.f32 %v4788_v53, %v4196_v3  ;;  %v716_v42 = vadd.f32 %v4789_v34, %v4199_v52  ;;  %v4791_v43 = vld [vmem:[#allocation7_spill] sm:$0xff] }
 0x25a   :  { %v1216_v49 = vpop.f32.mrb[88].mxu1  ;;  %v1329_v7 = vpop.f32.mrb[88].mxu0  ;;  %2354 = vmatprep.mubr.bf16.mxu1 %v1747_v29  ;;  %2451 = vmatprep.mubr.bf16.mxu0 %v1749_v37  ;;  %v718_v21 = vadd.f32 %v4791_v43, %v4209_v8  ;;  %v4803_v43 = vld [vmem:[#allocation18_spill] sm:$0xff] }
 0x25b   :  { %v1658_v11 = vmul.f32 %v1216_v49, %v589_v24  ;;  %v1660_v12 = vmul.f32 %v1329_v7, %v702_v22  ;;  %v1218_v27 = vpop.f32.mrb[89].mxu1  ;;  %v1331_v13 = vpop.f32.mrb[89].mxu0  ;;  %2355 = vmatmul.mubr.bf16.gmra.mrb[148].mxu1 %v1746_v36  ;;  %2452 = vmatmul.mubr.bf16.gmra.mrb[148].mxu0 %v1748_v18  ;;  %v4793_v49 = vld [vmem:[#allocation9_spill] sm:$0xff] }
 0x25c   :  { %v1659_v56 = vmul.f32 %v1218_v27, %v591_v30  ;;  %v1661_v4 = vmul.f32 %v1331_v13, %v704_v23  ;;  %v1220_v5 = vpop.f32.mrb[90].mxu1  ;;  %v1333_v57 = vpop.f32.mrb[90].mxu0  ;;  %3060 = vmatpush3.bf16.msra.mxu1 %v3275_v20  ;;  %3124 = vmatpush3.bf16.msra.mxu0 %v3277_v38  ;;  %v722_v7 = vadd.f32 %v4793_v49, %v4199_v52  ;;  %v4796_v13 = vld [vmem:[#allocation12_spill] sm:$0xff] }
 0x25d   :  { %v1666_v16 = vmul.f32 %v1220_v5, %v593_v48  ;;  %v1668_v14 = vmul.f32 %v1333_v57, %v706_v45  ;;  %v1222_v15 = vpop.f32.mrb[91].mxu1  ;;  %v1335_v0 = vpop.f32.mrb[91].mxu0  ;;  %3061 = vmatprep.subr.bf16.mxu1 %v3278_v6  ;;  %3125 = vmatprep.subr.bf16.mxu0 %v3280_v39  ;;  %v4792_v48 = vld [vmem:[#allocation8_spill] sm:$0xff]  ;;  %v4797_v5 = vld [vmem:[#allocation13_spill] sm:$0xff] }
 0x25e   :  { %v1667_v51 = vmul.f32 %v1222_v15, %v595_v10  ;;  %v1669_v63 = vmul.f32 %v1335_v0, %v708_v55  ;;  %v609_v45 = vadd.f32 %v4792_v48, %v4196_v3  ;;  %v4794_v10 = vld [vmem:[#allocation10_spill] sm:$0xff]  ;;  %v613_v55 = vadd.f32 %v4796_v13, %v4196_v3 }
 0x25f   :  { %v1754_v40 = vpack.c.bf16 %v1666_v16, %v1658_v11  ;;  %v1756_v41 = vpack.c.bf16 %v1668_v14, %v1660_v12  ;;  %v611_v11 = vadd.f32 %v4794_v10, %v4206_v17  ;;  %v4795_v12 = vld [vmem:[#allocation11_spill] sm:$0xff]  ;;  %v726_v57 = vadd.f32 %v4797_v5, %v4199_v52  ;;  %v4798_v15 = vld [vmem:[#allocation14_spill] sm:$0xff] }
 0x260   :  { %v1755_v46 = vpack.c.bf16 %v1667_v51, %v1659_v56  ;;  %v1757_v60 = vpack.c.bf16 %v1669_v63, %v1661_v4  ;;  %3062 = vmatpush3.bf16.msra.mxu1 %v3279_v19  ;;  %3126 = vmatpush3.bf16.msra.mxu0 %v3281_v58  ;;  %v724_v27 = vadd.f32 %v4795_v12, %v4209_v8  ;;  %v4799_v51 = vld [vmem:[#allocation15_spill] sm:$0xff]  ;;  %v4809_v12 = vld [vmem:[#allocation81_spill] sm:$0xff] }
 0x261   :  { %v615_v0 = vadd.f32 %v4798_v15, %v4206_v17  ;;  %v728_v63 = vadd.f32 %v4799_v51, %v4209_v8  ;;  %v4810_v15 = vld [vmem:[#allocation24_spill] sm:$0xff]  ;;  %v4811_v51 = vld [vmem:[#allocation25_spill] sm:$0xff] }
 0x262   :  { %v1226_v33 = vpop.f32.mrb[92].mxu1  ;;  %v1339_v54 = vpop.f32.mrb[92].mxu0  ;;  %2362 = vmatprep.mubr.bf16.mxu1 %v1755_v46  ;;  %2459 = vmatprep.mubr.bf16.mxu0 %v1757_v60 }
 0x263   :  { %v1674_v44 = vmul.f32 %v1226_v33, %v599_v59  ;;  %v1676_v1 = vmul.f32 %v1339_v54, %v712_v61  ;;  %v1228_v2 = vpop.f32.mrb[93].mxu1  ;;  %v1341_v50 = vpop.f32.mrb[93].mxu0  ;;  %2363 = vmatmul.mubr.bf16.gmra.mrb[152].mxu1 %v1754_v40  ;;  %2460 = vmatmul.mubr.bf16.gmra.mrb[152].mxu0 %v1756_v41  ;;  %v4800_v33 = vld [vmem:[#allocation78_spill] sm:$0xff] }
 0x264   :  { %v1675_v31 = vmul.f32 %v1228_v2, %v601_v25  ;;  %v1677_v35 = vmul.f32 %v1341_v50, %v714_v47  ;;  %v1230_v36 = vpop.f32.mrb[94].mxu1  ;;  %v1343_v18 = vpop.f32.mrb[94].mxu0  ;;  %v307_v54 = vsub.s32 4, %v4800_v33  ;;  %v4802_v2 = vld [vmem:[#allocation17_spill] sm:$0xff]  ;;  %v315_v28 = vsub.s32 6, %v4800_v33 }
 0x265   :  { %v1682_v29 = vmul.f32 %v1230_v36, %v603_v32  ;;  %v1684_v37 = vmul.f32 %v1343_v18, %v716_v42  ;;  %v1232_v20 = vpop.f32.mrb[95].mxu1  ;;  %v1345_v38 = vpop.f32.mrb[95].mxu0  ;;  %v732_v50 = vadd.f32 %v4802_v2, %v4199_v52  ;;  %v4805_v36 = vld [vmem:[#allocation20_spill] sm:$0xff] }
 0x266   :  { %v1683_v24 = vmul.f32 %v1232_v20, %v605_v9  ;;  %v1685_v22 = vmul.f32 %v1345_v38, %v718_v21  ;;  %v311_v9 = vsub.s32 5, %v4800_v33  ;;  %v621_v21 = vadd.f32 %v4803_v43, %v4206_v17  ;;  %v4806_v38 = vld [vmem:[#allocation21_spill] sm:$0xff] }
 0x267   :  { %v1762_v30 = vpack.c.bf16 %v1682_v29, %v1674_v44  ;;  %v1764_v6 = vpack.c.bf16 %v1684_v37, %v1676_v1  ;;  %v4801_v44 = vld [vmem:[#allocation16_spill] sm:$0xff]  ;;  %v623_v18 = vadd.f32 %v4805_v36, %v4196_v3  ;;  %v319_v29 = vsub.s32 7, %v4800_v33 }
 0x268   :  { %v1763_v39 = vpack.c.bf16 %v1683_v24, %v1675_v31  ;;  %v1765_v23 = vpack.c.bf16 %v1685_v22, %v1677_v35  ;;  %v619_v1 = vadd.f32 %v4801_v44, %v4196_v3  ;;  %v4804_v31 = vld [vmem:[#allocation19_spill] sm:$0xff]  ;;  %v736_v24 = vadd.f32 %v4806_v38, %v4199_v52 }
 0x269   :  { %v734_v35 = vadd.f32 %v4804_v31, %v4209_v8  ;;  %v4808_v3 = vld [vmem:[#allocation23_spill] sm:$0xff]  ;;  %v4437_v52 = vrot.slane %v4809_v12, %v315_v28  ;;  %v4440_v5 = vrot.slane %v4809_v12, %v311_v9 }
 0x26a   :  { %v1236_v56 = vpop.f32.mrb[96].mxu1  ;;  %v1349_v4 = vpop.f32.mrb[96].mxu0  ;;  %2370 = vmatprep.mubr.bf16.mxu1 %v1763_v39  ;;  %2467 = vmatprep.mubr.bf16.mxu0 %v1765_v23  ;;  %v4807_v23 = vld [vmem:[#allocation22_spill] sm:$0xff]  ;;  %v4817_v44 = vld [vmem:[#allocation31_spill] sm:$0xff] }
 0x26b   :  { %v1690_v19 = vmul.f32 %v1236_v56, %v609_v45  ;;  %v1692_v58 = vmul.f32 %v1349_v4, %v722_v7  ;;  %v1238_v16 = vpop.f32.mrb[97].mxu1  ;;  %v1351_v14 = vpop.f32.mrb[97].mxu0  ;;  %2371 = vmatmul.mubr.bf16.gmra.mrb[156].mxu1 %v1762_v30  ;;  %2468 = vmatmul.mubr.bf16.gmra.mrb[156].mxu0 %v1764_v6  ;;  %v625_v48 = vadd.f32 %v4807_v23, %v4206_v17 }
 0x26c   :  { %v1691_v40 = vmul.f32 %v1238_v16, %v611_v11  ;;  %v1693_v41 = vmul.f32 %v1351_v14, %v724_v27  ;;  %v1240_v46 = vpop.f32.mrb[98].mxu1  ;;  %v1353_v60 = vpop.f32.mrb[98].mxu0  ;;  %v738_v45 = vadd.f32 %v4808_v3, %v4209_v8  ;;  %v4434_v27 = vrot.slane %v4809_v12, %v307_v54 }
 0x26d   :  { %v1698_v59 = vmul.f32 %v1240_v46, %v613_v55  ;;  %v1700_v61 = vmul.f32 %v1353_v60, %v726_v57  ;;  %v1242_v62 = vpop.f32.mrb[99].mxu1  ;;  %v1355_v25 = vpop.f32.mrb[99].mxu0  ;;  %v4443_v17 = vrot.slane %v4809_v12, %v319_v29  ;;  %v4813_v46 = vld [vmem:[#allocation27_spill] sm:$0xff] }
 0x26e   :  { %v1699_v26 = vmul.f32 %v1242_v62, %v615_v0  ;;  %v1701_v47 = vmul.f32 %v1355_v25, %v728_v63  ;;  %v775_v0 = vadd.f32 %v4810_v15, %v4434_v27  ;;  %v888_v63 = vadd.f32 %v4811_v51, %v4437_v52 }
 0x26f   :  { %v1770_v53 = vpack.c.bf16 %v1698_v59, %v1690_v19  ;;  %v1772_v32 = vpack.c.bf16 %v1700_v61, %v1692_v58  ;;  %v890_v60 = vadd.f32 %v4813_v46, %v4443_v17  ;;  %v4814_v59 = vld [vmem:[#allocation28_spill] sm:$0xff] }
 0x270   :  { %v1771_v34 = vpack.c.bf16 %v1699_v26, %v1691_v40  ;;  %v1773_v42 = vpack.c.bf16 %v1701_v47, %v1693_v41  ;;  %v4812_v40 = vld [vmem:[#allocation26_spill] sm:$0xff]  ;;  %v779_v61 = vadd.f32 %v4814_v59, %v4434_v27  ;;  %v4815_v26 = vld [vmem:[#allocation29_spill] sm:$0xff] }
 0x271   :  { %v777_v41 = vadd.f32 %v4812_v40, %v4440_v5  ;;  %v892_v47 = vadd.f32 %v4815_v26, %v4437_v52  ;;  %v4826_v26 = vld [vmem:[#allocation40_spill] sm:$0xff] }
 0x272   :  { %v1246_v37 = vpop.f32.mrb[100].mxu1  ;;  %v1359_v20 = vpop.f32.mrb[100].mxu0  ;;  %2378 = vmatprep.mubr.bf16.mxu1 %v1771_v34  ;;  %2475 = vmatprep.mubr.bf16.mxu0 %v1773_v42  ;;  %v4816_v34 = vld [vmem:[#allocation30_spill] sm:$0xff] }
 0x273   :  { %v1706_v22 = vmul.f32 %v1246_v37, %v619_v1  ;;  %v1708_v30 = vmul.f32 %v1359_v20, %v732_v50  ;;  %v1248_v6 = vpop.f32.mrb[101].mxu1  ;;  %v1361_v39 = vpop.f32.mrb[101].mxu0  ;;  %2379 = vmatmul.mubr.bf16.gmra.mrb[160].mxu1 %v1770_v53  ;;  %2476 = vmatmul.mubr.bf16.gmra.mrb[160].mxu0 %v1772_v32  ;;  %v781_v42 = vadd.f32 %v4816_v34, %v4440_v5  ;;  %v4829_v34 = vld [vmem:[#allocation43_spill] sm:$0xff] }
 0x274   :  { %v1707_v49 = vmul.f32 %v1248_v6, %v621_v21  ;;  %v1709_v7 = vmul.f32 %v1361_v39, %v734_v35  ;;  %v1250_v10 = vpop.f32.mrb[102].mxu1  ;;  %v1363_v11 = vpop.f32.mrb[102].mxu0  ;;  %v894_v1 = vadd.f32 %v4817_v44, %v4443_v17  ;;  %v4820_v39 = vld [vmem:[#allocation34_spill] sm:$0xff]  ;;  %v4830_v44 = vld [vmem:[#allocation44_spill] sm:$0xff] }
 0x275   :  { %v1714_v13 = vmul.f32 %v1250_v10, %v623_v18  ;;  %v1716_v55 = vmul.f32 %v1363_v11, %v736_v24  ;;  %v1252_v56 = vpop.f32.mrb[103].mxu1  ;;  %v1365_v4 = vpop.f32.mrb[103].mxu0  ;;  %v4818_v24 = vld [vmem:[#allocation32_spill] sm:$0xff]  ;;  %v787_v23 = vadd.f32 %v4820_v39, %v4440_v5  ;;  %v4823_v11 = vld [vmem:[#allocation37_spill] sm:$0xff] }
 0x276   :  { %v1715_v8 = vmul.f32 %v1252_v56, %v625_v48  ;;  %v1717_v57 = vmul.f32 %v1365_v4, %v738_v45  ;;  %v4821_v48 = vld [vmem:[#allocation35_spill] sm:$0xff]  ;;  %v4822_v45 = vld [vmem:[#allocation36_spill] sm:$0xff]  ;;  %v902_v12 = vadd.f32 %v4823_v11, %v4437_v52 }
 0x277   :  { %v1778_v19 = vpack.c.bf16 %v1714_v13, %v1706_v22  ;;  %v1780_v58 = vpack.c.bf16 %v1716_v55, %v1708_v30  ;;  %v785_v22 = vadd.f32 %v4818_v24, %v4434_v27  ;;  %v4819_v30 = vld [vmem:[#allocation33_spill] sm:$0xff]  ;;  %v900_v3 = vadd.f32 %v4821_v48, %v4443_v17  ;;  %v4834_v11 = vld [vmem:[#allocation48_spill] sm:$0xff] }
 0x278   :  { %v1779_v16 = vpack.c.bf16 %v1715_v8, %v1707_v49  ;;  %v1781_v14 = vpack.c.bf16 %v1717_v57, %v1709_v7  ;;  %v898_v6 = vadd.f32 %v4819_v30, %v4437_v52  ;;  %v789_v49 = vadd.f32 %v4822_v45, %v4434_v27  ;;  %v4824_v8 = vld [vmem:[#allocation38_spill] sm:$0xff] }
 0x279   :  { %v791_v57 = vadd.f32 %v4824_v8, %v4440_v5  ;;  %v4837_v8 = vld [vmem:[#allocation51_spill] sm:$0xff] }
 0x27a   :  { %v1402_v62 = vpop.f32.mrb[104].mxu1  ;;  %v1515_v25 = vpop.f32.mrb[104].mxu0  ;;  %2386 = vmatprep.mubr.bf16.mxu1 %v1779_v16  ;;  %2483 = vmatprep.mubr.bf16.mxu0 %v1781_v14 }
 0x27b   :  { %v1598_v53 = vmul.f32 %v1402_v62, %v775_v0  ;;  %v1600_v32 = vmul.f32 %v1515_v25, %v888_v63  ;;  %v1404_v33 = vpop.f32.mrb[105].mxu1  ;;  %v1517_v54 = vpop.f32.mrb[105].mxu0  ;;  %2387 = vmatmul.mubr.bf16.gmra.mrb[164].mxu1 %v1778_v19  ;;  %2484 = vmatmul.mubr.bf16.gmra.mrb[164].mxu0 %v1780_v58  ;;  %v4825_v19 = vld [vmem:[#allocation39_spill] sm:$0xff] }
 0x27c   :  { %v1599_v2 = vmul.f32 %v1404_v33, %v777_v41  ;;  %v1601_v50 = vmul.f32 %v1517_v54, %v890_v60  ;;  %v1406_v28 = vpop.f32.mrb[106].mxu1  ;;  %v1519_v9 = vpop.f32.mrb[106].mxu0  ;;  %v904_v58 = vadd.f32 %v4825_v19, %v4443_v17  ;;  %v4828_v33 = vld [vmem:[#allocation42_spill] sm:$0xff]  ;;  %v4838_v19 = vld [vmem:[#allocation52_spill] sm:$0xff] }
 0x27d   :  { %v1606_v43 = vmul.f32 %v1406_v28, %v779_v61  ;;  %v1608_v21 = vmul.f32 %v1519_v9, %v892_v47  ;;  %v1408_v31 = vpop.f32.mrb[107].mxu1  ;;  %v1521_v35 = vpop.f32.mrb[107].mxu0  ;;  %v795_v47 = vadd.f32 %v4826_v26, %v4434_v27  ;;  %v797_v54 = vadd.f32 %v4828_v33, %v4440_v5  ;;  %v4831_v28 = vld [vmem:[#allocation45_spill] sm:$0xff] }
 0x27e   :  { %v1607_v36 = vmul.f32 %v1408_v31, %v781_v42  ;;  %v1609_v18 = vmul.f32 %v1521_v35, %v894_v1  ;;  %v910_v42 = vadd.f32 %v4829_v34, %v4443_v17  ;;  %v799_v1 = vadd.f32 %v4830_v44, %v4434_v27 }
 0x27f   :  { %v1726_v29 = vpack.c.bf16 %v1606_v43, %v1598_v53  ;;  %v1728_v37 = vpack.c.bf16 %v1608_v21, %v1600_v32  ;;  %v4827_v53 = vld [vmem:[#allocation41_spill] sm:$0xff]  ;;  %v912_v9 = vadd.f32 %v4831_v28, %v4437_v52  ;;  %v4842_v28 = vld [vmem:[#allocation56_spill] sm:$0xff] }
 0x280   :  { %v1727_v20 = vpack.c.bf16 %v1607_v36, %v1599_v2  ;;  %v1729_v38 = vpack.c.bf16 %v1609_v18, %v1601_v50  ;;  %v908_v32 = vadd.f32 %v4827_v53, %v4437_v52  ;;  %v4832_v36 = vld [vmem:[#allocation46_spill] sm:$0xff] }
 0x281   :  { %v801_v18 = vadd.f32 %v4832_v36, %v4440_v5  ;;  %v4845_v36 = vld [vmem:[#allocation59_spill] sm:$0xff] }
 0x282   :  { %v1412_v7 = vpop.f32.mrb[108].mxu1  ;;  %v1525_v10 = vpop.f32.mrb[108].mxu0  ;;  %2524 = vmatprep.mubr.bf16.mxu1 %v1727_v20  ;;  %2621 = vmatprep.mubr.bf16.mxu0 %v1729_v38 }
 0x283   :  { %v1614_v13 = vmul.f32 %v1412_v7, %v785_v22  ;;  %v1616_v55 = vmul.f32 %v1525_v10, %v898_v6  ;;  %v1414_v56 = vpop.f32.mrb[109].mxu1  ;;  %v1527_v4 = vpop.f32.mrb[109].mxu0  ;;  %2525 = vmatmul.mubr.bf16.vlgmr.msra.gmra.mrb[168].mxu1 %v1726_v29  ;;  %2622 = vmatmul.mubr.bf16.vlgmr.msra.gmra.mrb[168].mxu0 %v1728_v37  ;;  %v4833_v29 = vld [vmem:[#allocation47_spill] sm:$0xff] }
 0x284   :  { %v1615_v16 = vmul.f32 %v1414_v56, %v787_v23  ;;  %v1617_v14 = vmul.f32 %v1527_v4, %v900_v3  ;;  %v1416_v15 = vpop.f32.mrb[110].mxu1  ;;  %v1529_v0 = vpop.f32.mrb[110].mxu0  ;;  %v914_v37 = vadd.f32 %v4833_v29, %v4443_v17  ;;  %v4836_v56 = vld [vmem:[#allocation50_spill] sm:$0xff]  ;;  %v4846_v29 = vld [vmem:[#allocation60_spill] sm:$0xff] }
 0x285   :  { %v1622_v51 = vmul.f32 %v1416_v15, %v789_v49  ;;  %v1624_v63 = vmul.f32 %v1529_v0, %v902_v12  ;;  %v1418_v40 = vpop.f32.mrb[111].mxu1  ;;  %v1531_v41 = vpop.f32.mrb[111].mxu0  ;;  %v805_v12 = vadd.f32 %v4834_v11, %v4434_v27  ;;  %v807_v4 = vadd.f32 %v4836_v56, %v4440_v5  ;;  %v4839_v15 = vld [vmem:[#allocation53_spill] sm:$0xff] }
 0x286   :  { %v1623_v46 = vmul.f32 %v1418_v40, %v791_v57  ;;  %v1625_v60 = vmul.f32 %v1531_v41, %v904_v58  ;;  %v920_v57 = vadd.f32 %v4837_v8, %v4443_v17  ;;  %v809_v58 = vadd.f32 %v4838_v19, %v4434_v27 }
 0x287   :  { %v1734_v59 = vpack.c.bf16 %v1622_v51, %v1614_v13  ;;  %v1736_v61 = vpack.c.bf16 %v1624_v63, %v1616_v55  ;;  %v4835_v13 = vld [vmem:[#allocation49_spill] sm:$0xff]  ;;  %v922_v0 = vadd.f32 %v4839_v15, %v4437_v52  ;;  %v4850_v15 = vld [vmem:[#allocation64_spill] sm:$0xff] }
 0x288   :  { %v1735_v62 = vpack.c.bf16 %v1623_v46, %v1615_v16  ;;  %v1737_v25 = vpack.c.bf16 %v1625_v60, %v1617_v14  ;;  %v918_v55 = vadd.f32 %v4835_v13, %v4437_v52  ;;  %v4840_v46 = vld [vmem:[#allocation54_spill] sm:$0xff] }
 0x289   :  { %v811_v60 = vadd.f32 %v4840_v46, %v4440_v5  ;;  %v4853_v46 = vld [vmem:[#allocation67_spill] sm:$0xff] }
 0x28a   :  { %v1422_v2 = vpop.f32.mrb[112].mxu1  ;;  %v1535_v50 = vpop.f32.mrb[112].mxu0  ;;  %2532 = vmatprep.mubr.bf16.mxu1 %v1735_v62  ;;  %2629 = vmatprep.mubr.bf16.mxu0 %v1737_v25 }
 0x28b   :  { %v1630_v43 = vmul.f32 %v1422_v2, %v795_v47  ;;  %v1632_v21 = vmul.f32 %v1535_v50, %v908_v32  ;;  %v1424_v31 = vpop.f32.mrb[113].mxu1  ;;  %v1537_v35 = vpop.f32.mrb[113].mxu0  ;;  %2533 = vmatmul.mubr.bf16.gmra.mrb[172].mxu1 %v1734_v59  ;;  %2630 = vmatmul.mubr.bf16.gmra.mrb[172].mxu0 %v1736_v61  ;;  %v4841_v59 = vld [vmem:[#allocation55_spill] sm:$0xff] }
 0x28c   :  { %v1631_v20 = vmul.f32 %v1424_v31, %v797_v54  ;;  %v1633_v38 = vmul.f32 %v1537_v35, %v910_v42  ;;  %v1426_v24 = vpop.f32.mrb[114].mxu1  ;;  %v1539_v22 = vpop.f32.mrb[114].mxu0  ;;  %v924_v61 = vadd.f32 %v4841_v59, %v4443_v17  ;;  %v4844_v31 = vld [vmem:[#allocation58_spill] sm:$0xff]  ;;  %v4854_v59 = vld [vmem:[#allocation68_spill] sm:$0xff] }
 0x28d   :  { %v1638_v30 = vmul.f32 %v1426_v24, %v799_v1  ;;  %v1640_v6 = vmul.f32 %v1539_v22, %v912_v9  ;;  %v1428_v39 = vpop.f32.mrb[115].mxu1  ;;  %v1541_v23 = vpop.f32.mrb[115].mxu0  ;;  %v815_v9 = vadd.f32 %v4842_v28, %v4434_v27  ;;  %v817_v35 = vadd.f32 %v4844_v31, %v4440_v5  ;;  %v4847_v24 = vld [vmem:[#allocation61_spill] sm:$0xff] }
 0x28e   :  { %v1639_v48 = vmul.f32 %v1428_v39, %v801_v18  ;;  %v1641_v3 = vmul.f32 %v1541_v23, %v914_v37  ;;  %v930_v18 = vadd.f32 %v4845_v36, %v4443_v17  ;;  %v819_v37 = vadd.f32 %v4846_v29, %v4434_v27 }
 0x28f   :  { %v1742_v45 = vpack.c.bf16 %v1638_v30, %v1630_v43  ;;  %v1744_v49 = vpack.c.bf16 %v1640_v6, %v1632_v21  ;;  %v4843_v43 = vld [vmem:[#allocation57_spill] sm:$0xff]  ;;  %v932_v22 = vadd.f32 %v4847_v24, %v4437_v52  ;;  %v4858_v24 = vld [vmem:[#allocation72_spill] sm:$0xff] }
 0x290   :  { %v1743_v7 = vpack.c.bf16 %v1639_v48, %v1631_v20  ;;  %v1745_v10 = vpack.c.bf16 %v1641_v3, %v1633_v38  ;;  %v928_v21 = vadd.f32 %v4843_v43, %v4437_v52  ;;  %v4848_v48 = vld [vmem:[#allocation62_spill] sm:$0xff] }
 0x291   :  { %v821_v3 = vadd.f32 %v4848_v48, %v4440_v5  ;;  %v4861_v48 = vld [vmem:[#allocation75_spill] sm:$0xff] }
 0x292   :  { %v1432_v16 = vpop.f32.mrb[116].mxu1  ;;  %v1545_v14 = vpop.f32.mrb[116].mxu0  ;;  %2540 = vmatprep.mubr.bf16.mxu1 %v1743_v7  ;;  %2637 = vmatprep.mubr.bf16.mxu0 %v1745_v10 }
 0x293   :  { %v1646_v51 = vmul.f32 %v1432_v16, %v805_v12  ;;  %v1648_v63 = vmul.f32 %v1545_v14, %v918_v55  ;;  %v1434_v40 = vpop.f32.mrb[117].mxu1  ;;  %v1547_v41 = vpop.f32.mrb[117].mxu0  ;;  %2541 = vmatmul.mubr.bf16.gmra.mrb[176].mxu1 %v1742_v45  ;;  %2638 = vmatmul.mubr.bf16.gmra.mrb[176].mxu0 %v1744_v49  ;;  %v4849_v45 = vld [vmem:[#allocation63_spill] sm:$0xff] }
 0x294   :  { %v1647_v62 = vmul.f32 %v1434_v40, %v807_v4  ;;  %v1649_v25 = vmul.f32 %v1547_v41, %v920_v57  ;;  %v1436_v26 = vpop.f32.mrb[118].mxu1  ;;  %v1549_v47 = vpop.f32.mrb[118].mxu0  ;;  %v934_v49 = vadd.f32 %v4849_v45, %v4443_v17  ;;  %v4852_v40 = vld [vmem:[#allocation66_spill] sm:$0xff]  ;;  %v4862_v45 = vld [vmem:[#allocation76_spill] sm:$0xff] }
 0x295   :  { %v1654_v53 = vmul.f32 %v1436_v26, %v809_v58  ;;  %v1656_v32 = vmul.f32 %v1549_v47, %v922_v0  ;;  %v1438_v33 = vpop.f32.mrb[119].mxu1  ;;  %v1551_v54 = vpop.f32.mrb[119].mxu0  ;;  %v825_v0 = vadd.f32 %v4850_v15, %v4434_v27  ;;  %v827_v41 = vadd.f32 %v4852_v40, %v4440_v5  ;;  %v4855_v26 = vld [vmem:[#allocation69_spill] sm:$0xff] }
 0x296   :  { %v1655_v34 = vmul.f32 %v1438_v33, %v811_v60  ;;  %v1657_v42 = vmul.f32 %v1551_v54, %v924_v61  ;;  %v940_v60 = vadd.f32 %v4853_v46, %v4443_v17  ;;  %v829_v61 = vadd.f32 %v4854_v59, %v4434_v27 }
 0x297   :  { %v1750_v44 = vpack.c.bf16 %v1654_v53, %v1646_v51  ;;  %v1752_v1 = vpack.c.bf16 %v1656_v32, %v1648_v63  ;;  %v4851_v51 = vld [vmem:[#allocation65_spill] sm:$0xff]  ;;  %v942_v47 = vadd.f32 %v4855_v26, %v4437_v52  ;;  %v4866_v26 = vld [vmem:[#allocation82_spill] sm:$0xff] }
 0x298   :  { %v1751_v2 = vpack.c.bf16 %v1655_v34, %v1647_v62  ;;  %v1753_v50 = vpack.c.bf16 %v1657_v42, %v1649_v25  ;;  %v938_v63 = vadd.f32 %v4851_v51, %v4437_v52  ;;  %v4856_v34 = vld [vmem:[#allocation70_spill] sm:$0xff] }
 0x299   :  { %v831_v42 = vadd.f32 %v4856_v34, %v4440_v5  ;;  %v4869_v34 = vld [vmem:[#allocation85_spill] sm:$0xff] }
 0x29a   :  { %v1442_v20 = vpop.f32.mrb[120].mxu1  ;;  %v1555_v38 = vpop.f32.mrb[120].mxu0  ;;  %2548 = vmatprep.mubr.bf16.mxu1 %v1751_v2  ;;  %2645 = vmatprep.mubr.bf16.mxu0 %v1753_v50 }
 0x29b   :  { %v1662_v30 = vmul.f32 %v1442_v20, %v815_v9  ;;  %v1664_v6 = vmul.f32 %v1555_v38, %v928_v21  ;;  %v1444_v39 = vpop.f32.mrb[121].mxu1  ;;  %v1557_v23 = vpop.f32.mrb[121].mxu0  ;;  %2549 = vmatmul.mubr.bf16.gmra.mrb[180].mxu1 %v1750_v44  ;;  %2646 = vmatmul.mubr.bf16.gmra.mrb[180].mxu0 %v1752_v1  ;;  %v4857_v44 = vld [vmem:[#allocation71_spill] sm:$0xff] }
 0x29c   :  { %v1663_v7 = vmul.f32 %v1444_v39, %v817_v35  ;;  %v1665_v10 = vmul.f32 %v1557_v23, %v930_v18  ;;  %v1446_v11 = vpop.f32.mrb[122].mxu1  ;;  %v1559_v12 = vpop.f32.mrb[122].mxu0  ;;  %v944_v1 = vadd.f32 %v4857_v44, %v4443_v17  ;;  %v4860_v39 = vld [vmem:[#allocation74_spill] sm:$0xff] }
 0x29d   :  { %v1670_v13 = vmul.f32 %v1446_v11, %v819_v37  ;;  %v1672_v55 = vmul.f32 %v1559_v12, %v932_v22  ;;  %v1448_v56 = vpop.f32.mrb[123].mxu1  ;;  %v1561_v4 = vpop.f32.mrb[123].mxu0  ;;  %v835_v22 = vadd.f32 %v4858_v24, %v4434_v27  ;;  %v837_v23 = vadd.f32 %v4860_v39, %v4440_v5  ;;  %v4863_v11 = vld [vmem:[#allocation77_spill] sm:$0xff]  ;;  %v4870_v44 = vld [vmem:[#allocation86_spill] sm:$0xff] }
 0x29e   :  { %v1671_v8 = vmul.f32 %v1448_v56, %v821_v3  ;;  %v1673_v57 = vmul.f32 %v1561_v4, %v934_v49  ;;  %v950_v3 = vadd.f32 %v4861_v48, %v4443_v17  ;;  %v839_v49 = vadd.f32 %v4862_v45, %v4434_v27 }
 0x29f   :  { %v1758_v19 = vpack.c.bf16 %v1670_v13, %v1662_v30  ;;  %v1760_v58 = vpack.c.bf16 %v1672_v55, %v1664_v6  ;;  %v4859_v30 = vld [vmem:[#allocation73_spill] sm:$0xff]  ;;  %v952_v12 = vadd.f32 %v4863_v11, %v4437_v52 }
 0x2a0   :  { %v1759_v16 = vpack.c.bf16 %v1671_v8, %v1663_v7  ;;  %v1761_v14 = vpack.c.bf16 %v1673_v57, %v1665_v10  ;;  %v948_v6 = vadd.f32 %v4859_v30, %v4437_v52  ;;  %v4864_v8 = vld [vmem:[#allocation79_spill] sm:$0xff] }
 0x2a1   :  { %v841_v57 = vadd.f32 %v4864_v8, %v4440_v5 }
 0x2a2   :  { %v1452_v62 = vpop.f32.mrb[124].mxu1  ;;  %v1565_v25 = vpop.f32.mrb[124].mxu0  ;;  %2556 = vmatprep.mubr.bf16.mxu1 %v1759_v16  ;;  %2653 = vmatprep.mubr.bf16.mxu0 %v1761_v14 }
 0x2a3   :  { %v1678_v53 = vmul.f32 %v1452_v62, %v825_v0  ;;  %v1680_v32 = vmul.f32 %v1565_v25, %v938_v63  ;;  %v1454_v33 = vpop.f32.mrb[125].mxu1  ;;  %v1567_v54 = vpop.f32.mrb[125].mxu0  ;;  %2557 = vmatmul.mubr.bf16.gmra.mrb[184].mxu1 %v1758_v19  ;;  %2654 = vmatmul.mubr.bf16.gmra.mrb[184].mxu0 %v1760_v58  ;;  %v4865_v19 = vld [vmem:[#allocation80_spill] sm:$0xff] }
 0x2a4   :  { %v1679_v2 = vmul.f32 %v1454_v33, %v827_v41  ;;  %v1681_v50 = vmul.f32 %v1567_v54, %v940_v60  ;;  %v1456_v28 = vpop.f32.mrb[126].mxu1  ;;  %v1569_v9 = vpop.f32.mrb[126].mxu0  ;;  %v954_v58 = vadd.f32 %v4865_v19, %v4443_v17  ;;  %v4868_v33 = vld [vmem:[#allocation84_spill] sm:$0xff] }
 0x2a5   :  { %v1686_v43 = vmul.f32 %v1456_v28, %v829_v61  ;;  %v1688_v21 = vmul.f32 %v1569_v9, %v942_v47  ;;  %v1458_v31 = vpop.f32.mrb[127].mxu1  ;;  %v1571_v35 = vpop.f32.mrb[127].mxu0  ;;  %v845_v47 = vadd.f32 %v4866_v26, %v4434_v27  ;;  %v847_v54 = vadd.f32 %v4868_v33, %v4440_v5  ;;  %v4871_v28 = vld [vmem:[#allocation87_spill] sm:$0xff] }
 0x2a6   :  { %v1687_v36 = vmul.f32 %v1458_v31, %v831_v42  ;;  %v1689_v18 = vmul.f32 %v1571_v35, %v944_v1  ;;  %v960_v42 = vadd.f32 %v4869_v34, %v4443_v17  ;;  %v849_v1 = vadd.f32 %v4870_v44, %v4434_v27 }
 0x2a7   :  { %v1766_v29 = vpack.c.bf16 %v1686_v43, %v1678_v53  ;;  %v1768_v37 = vpack.c.bf16 %v1688_v21, %v1680_v32  ;;  %v4867_v53 = vld [vmem:[#allocation83_spill] sm:$0xff]  ;;  %v962_v9 = vadd.f32 %v4871_v28, %v4437_v52 }
 0x2a8   :  { %v1767_v20 = vpack.c.bf16 %v1687_v36, %v1679_v2  ;;  %v1769_v38 = vpack.c.bf16 %v1689_v18, %v1681_v50  ;;  %v958_v32 = vadd.f32 %v4867_v53, %v4437_v52  ;;  %v4872_v36 = vld [vmem:[#allocation88_spill] sm:$0xff] }
 0x2a9   :  { %v851_v18 = vadd.f32 %v4872_v36, %v4440_v5 }
 0x2aa   :  { %v1462_v7 = vpop.f32.mrb[128].mxu1  ;;  %v1575_v10 = vpop.f32.mrb[128].mxu0  ;;  %2564 = vmatprep.mubr.bf16.mxu1 %v1767_v20  ;;  %2661 = vmatprep.mubr.bf16.mxu0 %v1769_v38 }
 0x2ab   :  { %v1694_v13 = vmul.f32 %v1462_v7, %v835_v22  ;;  %v1696_v55 = vmul.f32 %v1575_v10, %v948_v6  ;;  %v1464_v56 = vpop.f32.mrb[129].mxu1  ;;  %v1577_v4 = vpop.f32.mrb[129].mxu0  ;;  %2565 = vmatmul.mubr.bf16.gmra.mrb[188].mxu1 %v1766_v29  ;;  %2662 = vmatmul.mubr.bf16.gmra.mrb[188].mxu0 %v1768_v37  ;;  %v4873_v29 = vld [vmem:[#allocation89_spill] sm:$0xff] }
 0x2ac   :  { %v1695_v16 = vmul.f32 %v1464_v56, %v837_v23  ;;  %v1697_v14 = vmul.f32 %v1577_v4, %v950_v3  ;;  %v1466_v15 = vpop.f32.mrb[130].mxu1  ;;  %v1579_v0 = vpop.f32.mrb[130].mxu0  ;;  %v964_v37 = vadd.f32 %v4873_v29, %v4443_v17 }
 0x2ad   :  { %v1702_v51 = vmul.f32 %v1466_v15, %v839_v49  ;;  %v1704_v63 = vmul.f32 %v1579_v0, %v952_v12  ;;  %v1468_v40 = vpop.f32.mrb[131].mxu1  ;;  %v1581_v41 = vpop.f32.mrb[131].mxu0 }
 0x2ae   :  { %v1703_v46 = vmul.f32 %v1468_v40, %v841_v57  ;;  %v1705_v60 = vmul.f32 %v1581_v41, %v954_v58 }
 0x2af   :  { %v1774_v59 = vpack.c.bf16 %v1702_v51, %v1694_v13  ;;  %v1776_v61 = vpack.c.bf16 %v1704_v63, %v1696_v55 }
 0x2b0   :  { %v1775_v62 = vpack.c.bf16 %v1703_v46, %v1695_v16  ;;  %v1777_v25 = vpack.c.bf16 %v1705_v60, %v1697_v14 }
 0x2b2   :  { %v1472_v2 = vpop.f32.mrb[132].mxu1  ;;  %v1585_v50 = vpop.f32.mrb[132].mxu0  ;;  %2572 = vmatprep.mubr.bf16.mxu1 %v1775_v62  ;;  %2669 = vmatprep.mubr.bf16.mxu0 %v1777_v25 }
 0x2b3   :  { %v1710_v43 = vmul.f32 %v1472_v2, %v845_v47  ;;  %v1712_v21 = vmul.f32 %v1585_v50, %v958_v32  ;;  %v1474_v31 = vpop.f32.mrb[133].mxu1  ;;  %v1587_v35 = vpop.f32.mrb[133].mxu0  ;;  %2573 = vmatmul.mubr.bf16.gmra.mrb[192].mxu1 %v1774_v59  ;;  %2670 = vmatmul.mubr.bf16.gmra.mrb[192].mxu0 %v1776_v61 }
 0x2b4   :  { %v1711_v27 = vmul.f32 %v1474_v31, %v847_v54  ;;  %v1713_v20 = vmul.f32 %v1587_v35, %v960_v42  ;;  %v1476_v38 = vpop.f32.mrb[134].mxu1  ;;  %v1589_v24 = vpop.f32.mrb[134].mxu0 }
 0x2b5   :  { %v1718_v22 = vmul.f32 %v1476_v38, %v849_v1  ;;  %v1720_v30 = vmul.f32 %v1589_v24, %v962_v9  ;;  %v1478_v6 = vpop.f32.mrb[135].mxu1  ;;  %v1591_v52 = vpop.f32.mrb[135].mxu0 }
 0x2b6   :  { %v1719_v39 = vmul.f32 %v1478_v6, %v851_v18  ;;  %v1721_v23 = vmul.f32 %v1591_v52, %v964_v37 }
 0x2b7   :  { %v1782_v48 = vpack.c.bf16 %v1718_v22, %v1710_v43  ;;  %v1784_v3 = vpack.c.bf16 %v1720_v30, %v1712_v21 }
 0x2b8   :  { %v1783_v45 = vpack.c.bf16 %v1719_v39, %v1711_v27  ;;  %v1785_v49 = vpack.c.bf16 %v1721_v23, %v1713_v20 }
 0x2ba   :  { %2580 = vmatprep.mubr.bf16.mxu1 %v1783_v45  ;;  %2677 = vmatprep.mubr.bf16.mxu0 %v1785_v49 }
 0x2bb   :  { %2581 = vmatmul.mubr.bf16.gmra.mrb[196].mxu1 %v1782_v48  ;;  %2678 = vmatmul.mubr.bf16.gmra.mrb[196].mxu0 %v1784_v3 }
 0x316   :  { %v2935_v5 = vpop.f32.mrb[136].mxu1  ;;  %v2999_v17 = vpop.f32.mrb[136].mxu0 }
 0x317   :  { %v2936_v7 = vpop.f32.mrb[137].mxu1  ;;  %v3000_v10 = vpop.f32.mrb[137].mxu0 }
 0x318   :  { %v2937_v11 = vadd.f32 %v2936_v7, %v2935_v5  ;;  %v3001_v12 = vadd.f32 %v3000_v10, %v2999_v17  ;;  %v2938_v13 = vpop.f32.mrb[138].mxu1  ;;  %v3002_v55 = vpop.f32.mrb[138].mxu0 }
 0x319   :  { %v2939_v56 = vpop.f32.mrb[139].mxu1  ;;  %v3003_v4 = vpop.f32.mrb[139].mxu0 }
 0x31a   :  { %v4573_v8 = vadd.f32 %v3001_v12, %v2937_v11  ;;  %v2940_v57 = vadd.f32 %v2939_v56, %v2938_v13  ;;  %v3004_v19 = vadd.f32 %v3003_v4, %v3002_v55 }
 0x31c   :  { %v4575_v58 = vadd.f32 %v3004_v19, %v2940_v57 }
 0x31e   :  { %v2941_v16 = vpop.f32.mrb[140].mxu1  ;;  %v3005_v14 = vpop.f32.mrb[140].mxu0 }
 0x31f   :  { %v2942_v15 = vpop.f32.mrb[141].mxu1  ;;  %v3006_v0 = vpop.f32.mrb[141].mxu0 }
 0x320   :  { %v2943_v51 = vadd.f32 %v2942_v15, %v2941_v16  ;;  %v3007_v63 = vadd.f32 %v3006_v0, %v3005_v14  ;;  %v2944_v40 = vpop.f32.mrb[142].mxu1  ;;  %v3008_v41 = vpop.f32.mrb[142].mxu0 }
 0x321   :  { %v2945_v46 = vpop.f32.mrb[143].mxu1  ;;  %v3009_v60 = vpop.f32.mrb[143].mxu0 }
 0x322   :  { %v4577_v59 = vadd.f32 %v3007_v63, %v2943_v51  ;;  %v2946_v61 = vadd.f32 %v2945_v46, %v2944_v40  ;;  %v3010_v62 = vadd.f32 %v3009_v60, %v3008_v41 }
 0x324   :  { %v4579_v25 = vadd.f32 %v3010_v62, %v2946_v61 }
 0x326   :  { %v2947_v26 = vpop.f32.mrb[144].mxu1  ;;  %v3011_v47 = vpop.f32.mrb[144].mxu0 }
 0x327   :  { %v2948_v53 = vpop.f32.mrb[145].mxu1  ;;  %v3012_v32 = vpop.f32.mrb[145].mxu0 }
 0x328   :  { %v2949_v33 = vadd.f32 %v2948_v53, %v2947_v26  ;;  %v3013_v54 = vadd.f32 %v3012_v32, %v3011_v47  ;;  %v2950_v34 = vpop.f32.mrb[146].mxu1  ;;  %v3014_v42 = vpop.f32.mrb[146].mxu0 }
 0x329   :  { %v2951_v44 = vpop.f32.mrb[147].mxu1  ;;  %v3015_v1 = vpop.f32.mrb[147].mxu0 }
 0x32a   :  { %v4581_v2 = vadd.f32 %v3013_v54, %v2949_v33  ;;  %v2952_v50 = vadd.f32 %v2951_v44, %v2950_v34  ;;  %v3016_v28 = vadd.f32 %v3015_v1, %v3014_v42 }
 0x32c   :  { %v4583_v9 = vadd.f32 %v3016_v28, %v2952_v50 }
 0x32e   :  { %v2953_v43 = vpop.f32.mrb[148].mxu1  ;;  %v3017_v21 = vpop.f32.mrb[148].mxu0 }
 0x32f   :  { %v2954_v31 = vpop.f32.mrb[149].mxu1  ;;  %v3018_v35 = vpop.f32.mrb[149].mxu0 }
 0x330   :  { %v2955_v36 = vadd.f32 %v2954_v31, %v2953_v43  ;;  %v3019_v18 = vadd.f32 %v3018_v35, %v3017_v21  ;;  %v2956_v29 = vpop.f32.mrb[150].mxu1  ;;  %v3020_v37 = vpop.f32.mrb[150].mxu0 }
 0x331   :  { %v2957_v27 = vpop.f32.mrb[151].mxu1  ;;  %v3021_v20 = vpop.f32.mrb[151].mxu0 }
 0x332   :  { %v4585_v38 = vadd.f32 %v3019_v18, %v2955_v36  ;;  %v2958_v24 = vadd.f32 %v2957_v27, %v2956_v29  ;;  %v3022_v22 = vadd.f32 %v3021_v20, %v3020_v37 }
 0x334   :  { %v4587_v30 = vadd.f32 %v3022_v22, %v2958_v24 }
 0x336   :  { %v2959_v6 = vpop.f32.mrb[152].mxu1  ;;  %v3023_v52 = vpop.f32.mrb[152].mxu0 }
 0x337   :  { %v2960_v39 = vpop.f32.mrb[153].mxu1  ;;  %v3024_v23 = vpop.f32.mrb[153].mxu0 }
 0x338   :  { %v2961_v48 = vadd.f32 %v2960_v39, %v2959_v6  ;;  %v3025_v3 = vadd.f32 %v3024_v23, %v3023_v52  ;;  %v2962_v45 = vpop.f32.mrb[154].mxu1  ;;  %v3026_v49 = vpop.f32.mrb[154].mxu0 }
 0x339   :  { %v2963_v5 = vpop.f32.mrb[155].mxu1  ;;  %v3027_v17 = vpop.f32.mrb[155].mxu0 }
 0x33a   :  { %v4589_v7 = vadd.f32 %v3025_v3, %v2961_v48  ;;  %v2964_v10 = vadd.f32 %v2963_v5, %v2962_v45  ;;  %v3028_v11 = vadd.f32 %v3027_v17, %v3026_v49 }
 0x33c   :  { %v4591_v12 = vadd.f32 %v3028_v11, %v2964_v10 }
 0x33e   :  { %v2965_v13 = vpop.f32.mrb[156].mxu1  ;;  %v3029_v55 = vpop.f32.mrb[156].mxu0 }
 0x33f   :  { %v2966_v56 = vpop.f32.mrb[157].mxu1  ;;  %v3030_v4 = vpop.f32.mrb[157].mxu0 }
 0x340   :  { %v2967_v57 = vadd.f32 %v2966_v56, %v2965_v13  ;;  %v3031_v19 = vadd.f32 %v3030_v4, %v3029_v55  ;;  %v2968_v16 = vpop.f32.mrb[158].mxu1  ;;  %v3032_v14 = vpop.f32.mrb[158].mxu0 }
 0x341   :  { %v2969_v15 = vpop.f32.mrb[159].mxu1  ;;  %v3033_v0 = vpop.f32.mrb[159].mxu0 }
 0x342   :  { %v4593_v51 = vadd.f32 %v3031_v19, %v2967_v57  ;;  %v2970_v63 = vadd.f32 %v2969_v15, %v2968_v16  ;;  %v3034_v40 = vadd.f32 %v3033_v0, %v3032_v14 }
 0x344   :  { %v4595_v41 = vadd.f32 %v3034_v40, %v2970_v63 }
 0x346   :  { %v2971_v46 = vpop.f32.mrb[160].mxu1  ;;  %v3035_v60 = vpop.f32.mrb[160].mxu0 }
 0x347   :  { %v2972_v61 = vpop.f32.mrb[161].mxu1  ;;  %v3036_v62 = vpop.f32.mrb[161].mxu0 }
 0x348   :  { %v2973_v26 = vadd.f32 %v2972_v61, %v2971_v46  ;;  %v3037_v47 = vadd.f32 %v3036_v62, %v3035_v60  ;;  %v2974_v53 = vpop.f32.mrb[162].mxu1  ;;  %v3038_v32 = vpop.f32.mrb[162].mxu0 }
 0x349   :  { %v2975_v33 = vpop.f32.mrb[163].mxu1  ;;  %v3039_v54 = vpop.f32.mrb[163].mxu0 }
 0x34a   :  { %v4597_v34 = vadd.f32 %v3037_v47, %v2973_v26  ;;  %v2976_v42 = vadd.f32 %v2975_v33, %v2974_v53  ;;  %v3040_v44 = vadd.f32 %v3039_v54, %v3038_v32 }
 0x34c   :  { %v4599_v1 = vadd.f32 %v3040_v44, %v2976_v42 }
 0x34e   :  { %v2977_v50 = vpop.f32.mrb[164].mxu1  ;;  %v3041_v28 = vpop.f32.mrb[164].mxu0 }
 0x34f   :  { %v2978_v43 = vpop.f32.mrb[165].mxu1  ;;  %v3042_v21 = vpop.f32.mrb[165].mxu0 }
 0x350   :  { %v2979_v31 = vadd.f32 %v2978_v43, %v2977_v50  ;;  %v3043_v35 = vadd.f32 %v3042_v21, %v3041_v28  ;;  %v2980_v36 = vpop.f32.mrb[166].mxu1  ;;  %v3044_v18 = vpop.f32.mrb[166].mxu0 }
 0x351   :  { %v2981_v29 = vpop.f32.mrb[167].mxu1  ;;  %v3045_v37 = vpop.f32.mrb[167].mxu0 }
 0x352   :  { %v4601_v27 = vadd.f32 %v3043_v35, %v2979_v31  ;;  %v2982_v20 = vadd.f32 %v2981_v29, %v2980_v36  ;;  %v3046_v24 = vadd.f32 %v3045_v37, %v3044_v18 }
 0x354   :  { %v4603_v22 = vadd.f32 %v3046_v24, %v2982_v20 }
 0x356   :  { %v3063_v6 = vpop.f32.mrb[168].mxu1  ;;  %v3127_v52 = vpop.f32.mrb[168].mxu0 }
 0x357   :  { %v3064_v39 = vpop.f32.mrb[169].mxu1  ;;  %v3128_v23 = vpop.f32.mrb[169].mxu0 }
 0x358   :  { %v3065_v48 = vadd.f32 %v3064_v39, %v3063_v6  ;;  %v3129_v3 = vadd.f32 %v3128_v23, %v3127_v52  ;;  %v3066_v45 = vpop.f32.mrb[170].mxu1  ;;  %v3130_v49 = vpop.f32.mrb[170].mxu0 }
 0x359   :  { %v3067_v5 = vpop.f32.mrb[171].mxu1  ;;  %v3131_v17 = vpop.f32.mrb[171].mxu0 }
 0x35a   :  { %v2527_v10 = vadd.f32 %v3065_v48, %v4573_v8  ;;  %v3068_v11 = vadd.f32 %v3067_v5, %v3066_v45  ;;  %v3132_v13 = vadd.f32 %v3131_v17, %v3130_v49 }
 0x35c   :  { %v2624_v55 = vadd.f32 %v3129_v3, %v2527_v10  ;;  %v2530_v56 = vadd.f32 %v3068_v11, %v4575_v58 }
 0x35e   :  { %2686 = vst.msk [vmem:[%s4693_s8] sm:$0xff] %vm109_vm0, %v2624_v55  ;;  %v2627_v4 = vadd.f32 %v3132_v13, %v2530_v56  ;;  %v3069_v57 = vpop.f32.mrb[172].mxu1  ;;  %v3133_v19 = vpop.f32.mrb[172].mxu0 }
 0x35f   :  { %v3070_v16 = vpop.f32.mrb[173].mxu1  ;;  %v3134_v14 = vpop.f32.mrb[173].mxu0 }
 0x360   :  { %2687 = vst.msk [vmem:[%s4693_s8 + $0x8] sm:$0xff] %vm109_vm0, %v2627_v4  ;;  %v3071_v8 = vadd.f32 %v3070_v16, %v3069_v57  ;;  %v3135_v15 = vadd.f32 %v3134_v14, %v3133_v19  ;;  %v3072_v0 = vpop.f32.mrb[174].mxu1  ;;  %v3136_v63 = vpop.f32.mrb[174].mxu0 }
 0x361   :  { %v3073_v58 = vpop.f32.mrb[175].mxu1  ;;  %v3137_v40 = vpop.f32.mrb[175].mxu0 }
 0x362   :  { %v2535_v46 = vadd.f32 %v3071_v8, %v4577_v59  ;;  %v3074_v60 = vadd.f32 %v3073_v58, %v3072_v0  ;;  %v3138_v61 = vadd.f32 %v3137_v40, %v3136_v63 }
 0x364   :  { %v2632_v62 = vadd.f32 %v3135_v15, %v2535_v46  ;;  %v2538_v26 = vadd.f32 %v3074_v60, %v4579_v25 }
 0x366   :  { %2688 = vst.msk [vmem:[%s4693_s8 + $0x10] sm:$0xff] %vm109_vm0, %v2632_v62  ;;  %v2635_v47 = vadd.f32 %v3138_v61, %v2538_v26  ;;  %v3075_v53 = vpop.f32.mrb[176].mxu1  ;;  %v3139_v32 = vpop.f32.mrb[176].mxu0 }
 0x367   :  { %v3076_v33 = vpop.f32.mrb[177].mxu1  ;;  %v3140_v54 = vpop.f32.mrb[177].mxu0 }
 0x368   :  { %2689 = vst.msk [vmem:[%s4693_s8 + $0x18] sm:$0xff] %vm109_vm0, %v2635_v47  ;;  %v3077_v59 = vadd.f32 %v3076_v33, %v3075_v53  ;;  %v3141_v42 = vadd.f32 %v3140_v54, %v3139_v32  ;;  %v3078_v44 = vpop.f32.mrb[178].mxu1  ;;  %v3142_v50 = vpop.f32.mrb[178].mxu0 }
 0x369   :  { %v3079_v25 = vpop.f32.mrb[179].mxu1  ;;  %v3143_v28 = vpop.f32.mrb[179].mxu0 }
 0x36a   :  { %v2543_v43 = vadd.f32 %v3077_v59, %v4581_v2  ;;  %v3080_v21 = vadd.f32 %v3079_v25, %v3078_v44  ;;  %v3144_v31 = vadd.f32 %v3143_v28, %v3142_v50 }
 0x36c   :  { %v2640_v35 = vadd.f32 %v3141_v42, %v2543_v43  ;;  %v2546_v36 = vadd.f32 %v3080_v21, %v4583_v9 }
 0x36e   :  { %2690 = vst.msk [vmem:[%s4693_s8 + $0x20] sm:$0xff] %vm109_vm0, %v2640_v35  ;;  %v2643_v18 = vadd.f32 %v3144_v31, %v2546_v36  ;;  %v3081_v29 = vpop.f32.mrb[180].mxu1  ;;  %v3145_v37 = vpop.f32.mrb[180].mxu0 }
 0x36f   :  { %v3082_v20 = vpop.f32.mrb[181].mxu1  ;;  %v3146_v24 = vpop.f32.mrb[181].mxu0 }
 0x370   :  { %2691 = vst.msk [vmem:[%s4693_s8 + $0x28] sm:$0xff] %vm109_vm0, %v2643_v18  ;;  %v3083_v2 = vadd.f32 %v3082_v20, %v3081_v29  ;;  %v3147_v6 = vadd.f32 %v3146_v24, %v3145_v37  ;;  %v3084_v52 = vpop.f32.mrb[182].mxu1  ;;  %v3148_v39 = vpop.f32.mrb[182].mxu0 }
 0x371   :  { %v3085_v9 = vpop.f32.mrb[183].mxu1  ;;  %v3149_v23 = vpop.f32.mrb[183].mxu0 }
 0x372   :  { %v2551_v48 = vadd.f32 %v3083_v2, %v4585_v38  ;;  %v3086_v3 = vadd.f32 %v3085_v9, %v3084_v52  ;;  %v3150_v45 = vadd.f32 %v3149_v23, %v3148_v39 }
 0x374   :  { %v2648_v49 = vadd.f32 %v3147_v6, %v2551_v48  ;;  %v2554_v5 = vadd.f32 %v3086_v3, %v4587_v30 }
 0x376   :  { %2692 = vst.msk [vmem:[%s4693_s8 + $0x30] sm:$0xff] %vm109_vm0, %v2648_v49  ;;  %v2651_v17 = vadd.f32 %v3150_v45, %v2554_v5  ;;  %v3087_v10 = vpop.f32.mrb[184].mxu1  ;;  %v3151_v11 = vpop.f32.mrb[184].mxu0 }
 0x377   :  { %v3088_v13 = vpop.f32.mrb[185].mxu1  ;;  %v3152_v55 = vpop.f32.mrb[185].mxu0 }
 0x378   :  { %2693 = vst.msk [vmem:[%s4693_s8 + $0x38] sm:$0xff] %vm109_vm0, %v2651_v17  ;;  %v3089_v38 = vadd.f32 %v3088_v13, %v3087_v10  ;;  %v3153_v56 = vadd.f32 %v3152_v55, %v3151_v11  ;;  %v3090_v4 = vpop.f32.mrb[186].mxu1  ;;  %v3154_v57 = vpop.f32.mrb[186].mxu0 }
 0x379   :  { %v3091_v30 = vpop.f32.mrb[187].mxu1  ;;  %v3155_v19 = vpop.f32.mrb[187].mxu0 }
 0x37a   :  { %v2559_v16 = vadd.f32 %v3089_v38, %v4589_v7  ;;  %v3092_v14 = vadd.f32 %v3091_v30, %v3090_v4  ;;  %v3156_v8 = vadd.f32 %v3155_v19, %v3154_v57 }
 0x37c   :  { %v2656_v15 = vadd.f32 %v3153_v56, %v2559_v16  ;;  %v2562_v0 = vadd.f32 %v3092_v14, %v4591_v12 }
 0x37e   :  { %2694 = vst.msk [vmem:[%s4693_s8 + $0x40] sm:$0xff] %vm109_vm0, %v2656_v15  ;;  %v2659_v63 = vadd.f32 %v3156_v8, %v2562_v0  ;;  %v3093_v58 = vpop.f32.mrb[188].mxu1  ;;  %v3157_v40 = vpop.f32.mrb[188].mxu0 }
 0x37f   :  { %v3094_v46 = vpop.f32.mrb[189].mxu1  ;;  %v3158_v60 = vpop.f32.mrb[189].mxu0 }
 0x380   :  { %2695 = vst.msk [vmem:[%s4693_s8 + $0x48] sm:$0xff] %vm109_vm0, %v2659_v63  ;;  %v3095_v7 = vadd.f32 %v3094_v46, %v3093_v58  ;;  %v3159_v61 = vadd.f32 %v3158_v60, %v3157_v40  ;;  %v3096_v62 = vpop.f32.mrb[190].mxu1  ;;  %v3160_v26 = vpop.f32.mrb[190].mxu0 }
 0x381   :  { %v3097_v12 = vpop.f32.mrb[191].mxu1  ;;  %v3161_v47 = vpop.f32.mrb[191].mxu0 }
 0x382   :  { %v2567_v53 = vadd.f32 %v3095_v7, %v4593_v51  ;;  %v3098_v32 = vadd.f32 %v3097_v12, %v3096_v62  ;;  %v3162_v33 = vadd.f32 %v3161_v47, %v3160_v26 }
 0x384   :  { %v2664_v54 = vadd.f32 %v3159_v61, %v2567_v53  ;;  %v2570_v59 = vadd.f32 %v3098_v32, %v4595_v41 }
 0x386   :  { %2696 = vst.msk [vmem:[%s4693_s8 + $0x50] sm:$0xff] %vm109_vm0, %v2664_v54  ;;  %v2667_v42 = vadd.f32 %v3162_v33, %v2570_v59  ;;  %v3099_v44 = vpop.f32.mrb[192].mxu1  ;;  %v3163_v50 = vpop.f32.mrb[192].mxu0 }
 0x387   :  { %v3100_v25 = vpop.f32.mrb[193].mxu1  ;;  %v3164_v28 = vpop.f32.mrb[193].mxu0 }
 0x388   :  { %2697 = vst.msk [vmem:[%s4693_s8 + $0x58] sm:$0xff] %vm109_vm0, %v2667_v42  ;;  %v3101_v51 = vadd.f32 %v3100_v25, %v3099_v44  ;;  %v3165_v43 = vadd.f32 %v3164_v28, %v3163_v50  ;;  %v3102_v21 = vpop.f32.mrb[194].mxu1  ;;  %v3166_v31 = vpop.f32.mrb[194].mxu0 }
 0x389   :  { %v3103_v41 = vpop.f32.mrb[195].mxu1  ;;  %v3167_v35 = vpop.f32.mrb[195].mxu0 }
 0x38a   :  { %v2575_v36 = vadd.f32 %v3101_v51, %v4597_v34  ;;  %v3104_v18 = vadd.f32 %v3103_v41, %v3102_v21  ;;  %v3168_v29 = vadd.f32 %v3167_v35, %v3166_v31 }
 0x38c   :  { %v2672_v37 = vadd.f32 %v3165_v43, %v2575_v36  ;;  %v2578_v20 = vadd.f32 %v3104_v18, %v4599_v1 }
 0x38e   :  { %2698 = vst.msk [vmem:[%s4693_s8 + $0x60] sm:$0xff] %vm109_vm0, %v2672_v37  ;;  %v2675_v24 = vadd.f32 %v3168_v29, %v2578_v20  ;;  %v3105_v2 = vpop.f32.mrb[196].mxu1  ;;  %v3169_v6 = vpop.f32.mrb[196].mxu0 }
 0x38f   :  { %v3106_v52 = vpop.f32.mrb[197].mxu1  ;;  %v3170_v39 = vpop.f32.mrb[197].mxu0 }
 0x390   :  { %2699 = vst.msk [vmem:[%s4693_s8 + $0x68] sm:$0xff] %vm109_vm0, %v2675_v24  ;;  %v3107_v34 = vadd.f32 %v3106_v52, %v3105_v2  ;;  %v3171_v9 = vadd.f32 %v3170_v39, %v3169_v6  ;;  %v3108_v23 = vpop.f32.mrb[198].mxu1  ;;  %v3172_v48 = vpop.f32.mrb[198].mxu0 }
 0x391   :  { %v3109_v1 = vpop.f32.mrb[199].mxu1  ;;  %v3173_v3 = vpop.f32.mrb[199].mxu0 }
 0x392   :  { %v2583_v45 = vadd.f32 %v3107_v34, %v4601_v27  ;;  %v3110_v49 = vadd.f32 %v3109_v1, %v3108_v23  ;;  %v3174_v5 = vadd.f32 %v3173_v3, %v3172_v48 }
 0x394   :  { %v2680_v17 = vadd.f32 %v3171_v9, %v2583_v45  ;;  %v2586_v10 = vadd.f32 %v3110_v49, %v4603_v22 }
 0x396   :  { %2700 = vst.msk [vmem:[%s4693_s8 + $0x70] sm:$0xff] %vm109_vm0, %v2680_v17  ;;  %v2683_v11 = vadd.f32 %v3174_v5, %v2586_v10 }
 0x398   :  { %2701 = vst.msk [vmem:[%s4693_s8 + $0x78] sm:$0xff] %vm109_vm0, %v2683_v11 }

</bundles_post_ra>
